<compile_context>
chip_gen: v7x
topology: tpu7x:2x2x1
jax: 0.10.0
libtpu: 0.0.40
codegen_flags: <defaults>
</compile_context>

<pallas_src>
import functools
import math

import jax
import jax.numpy as jnp
from jax.experimental import pallas as pl
from jax.experimental.pallas import tpu as pltpu

NEG = -1e9        # additive mask / CRF label-padding value
LPAD = 128        # lane-dense padded label dimension (classifier + CRF)


def _layernorm(x, g, b, eps=1e-12):
    mu = jnp.mean(x, axis=-1, keepdims=True)
    var = jnp.mean((x - mu) ** 2, axis=-1, keepdims=True)
    return (x - mu) * jax.lax.rsqrt(var + eps) * g + b


# -----------------------------------------------------------------------------
# Pallas kernel 1: transformer encoder layer + token classifier.
# Grid = (2 levels,); one step processes every token row (B*S, H) of one level.
# -----------------------------------------------------------------------------
def _encoder_kernel(x_ref, bias_ref,
                    wqkv_ref, bqkv_ref, wo_ref, bo_ref,
                    ln1g_ref, ln1b_ref, w1_ref, b1_ref, w2_ref, b2_ref,
                    ln2g_ref, ln2b_ref, wc_ref, bc_ref,
                    out_ref, *, NH, HD, H):
    x = x_ref[...]                                # (R, H), R = B*S token rows
    bias = bias_ref[...]                          # (R, R) block-diag + pad mask

    # fused QKV projection: one (R,H) x (H,3H) matmul
    qkv = jnp.dot(x, wqkv_ref[...],
                  preferred_element_type=jnp.float32) + bqkv_ref[...]
    q = qkv[:, 0 * H:1 * H]
    k = qkv[:, 1 * H:2 * H]
    v = qkv[:, 2 * H:3 * H]

    scale = 1.0 / math.sqrt(HD)
    lane = jax.lax.broadcasted_iota(jnp.int32, (1, H), 1)

    # heads via full-width lane masks (no 8-wide lane slicing):
    #   (q*m_h) @ k^T == q_h @ k_h^T ;  sum_h P_h @ (v*m_h) = per-head contexts
    ctx = jnp.zeros_like(q)
    for h in range(NH):                           # static unroll over heads
        hm = ((lane >= h * HD) & (lane < (h + 1) * HD)).astype(jnp.float32)
        qm = q * hm
        s = jax.lax.dot_general(qm, k, (((1,), (1,)), ((), ())),
                                preferred_element_type=jnp.float32)
        s = s * scale + bias
        s = s - jnp.max(s, axis=-1, keepdims=True)
        p = jnp.exp(s)
        p = p * pl.reciprocal(jnp.sum(p, axis=-1, keepdims=True), approx=True)
        ctx = ctx + jnp.dot(p, v * hm, preferred_element_type=jnp.float32)

    attn = jnp.dot(ctx, wo_ref[...],
                   preferred_element_type=jnp.float32) + bo_ref[...]
    h1 = _layernorm(x + attn, ln1g_ref[...], ln1b_ref[...])
    ffn = jax.nn.gelu(
        jnp.dot(h1, w1_ref[...], preferred_element_type=jnp.float32)
        + b1_ref[...], approximate=True)
    ffn = jnp.dot(ffn, w2_ref[...], preferred_element_type=jnp.float32) + b2_ref[...]
    h2 = _layernorm(h1 + ffn, ln2g_ref[...], ln2b_ref[...])

    # lane-dense (R, 128) classifier output
    out_ref[...] = jnp.dot(h2, wc_ref[...],
                           preferred_element_type=jnp.float32) + bc_ref[...]


def _lvl_spec(shape):
    """BlockSpec selecting one level slice (leading dim squeezed)."""
    n = len(shape)
    return pl.BlockSpec((None,) + tuple(shape[1:]),
                        lambda l, _n=n: (l,) + (0,) * (_n - 1))


def encoder_classifier_pallas(xs, bias, w, num_heads=4):
    """xs: (2, B*S, H) stacked per-level embeddings; bias: (B*S, B*S);
    w: dict of level-stacked weights. Returns emissions (2, B*S, LPAD)."""
    NLVL, R, H = xs.shape
    HD = H // num_heads

    grid_spec = pltpu.PrefetchScalarGridSpec(
        num_scalar_prefetch=0,
        grid=(NLVL,),
        in_specs=[
            _lvl_spec(xs.shape),                               # x
            pl.BlockSpec((R, R), lambda l: (0, 0)),            # attention bias
            _lvl_spec(w["wqkv"].shape), _lvl_spec(w["bqkv"].shape),
            _lvl_spec(w["wo"].shape), _lvl_spec(w["bo"].shape),
            _lvl_spec(w["ln1_g"].shape), _lvl_spec(w["ln1_b"].shape),
            _lvl_spec(w["w1"].shape), _lvl_spec(w["b1"].shape),
            _lvl_spec(w["w2"].shape), _lvl_spec(w["b2"].shape),
            _lvl_spec(w["ln2_g"].shape), _lvl_spec(w["ln2_b"].shape),
            _lvl_spec(w["wc"].shape), _lvl_spec(w["bc"].shape),
        ],
        out_specs=pl.BlockSpec((None, R, LPAD), lambda l: (l, 0, 0)),
    )
    return pl.pallas_call(
        functools.partial(_encoder_kernel, NH=num_heads, HD=HD, H=H),
        out_shape=jax.ShapeDtypeStruct((NLVL, R, LPAD), jnp.float32),
        grid_spec=grid_spec,
        compiler_params=pltpu.CompilerParams(
            dimension_semantics=("parallel",)),
    )(xs, bias,
      w["wqkv"], w["bqkv"], w["wo"], w["bo"],
      w["ln1_g"], w["ln1_b"], w["w1"], w["b1"], w["w2"], w["b2"],
      w["ln2_g"], w["ln2_b"], w["wc"], w["bc"])


# -----------------------------------------------------------------------------
# Pallas kernel 2: CRF negative log-likelihood, vectorized over the batch.
# Grid = (2 levels,); per step one sequential pass over S with (B, L) carries.
# Label padding uses NEG transitions/start/end so the padded label columns
# never contribute to log Z; the gold path only touches valid labels.
# NOTE: assumes mask[:, 0] == 1 for every row (torchcrf convention).
# -----------------------------------------------------------------------------
def _crf_kernel(emis_ref, oh_ref, mask_ref, trans_ref, start_ref, end_ref,
                out_ref, *, S):
    trans = trans_ref[...]                        # (L, L) padded with NEG
    start = start_ref[...]                        # (1, L)
    end = end_ref[...]                            # (1, L)

    # column-max shift so exp(.) <= 1 (stabilized vs. raw exp(trans))
    cmax = jnp.max(trans, axis=0, keepdims=True)  # (1, L)
    exp_trans = jnp.exp(trans - cmax)             # (L, L)

    e0 = emis_ref[0]                              # (B, L)
    oh0 = oh_ref[0]                               # (B, L) one-hot labels @ t=0
    alpha0 = start + e0                           # (B, L)
    score0 = jnp.sum(alpha0 * oh0, axis=-1, keepdims=True)      # (B, 1)

    def body(t, carry):
        alpha, score, last_oh = carry
        e_t = emis_ref[t]                         # (B, L)
        oh_t = oh_ref[t]
        oh_p = oh_ref[t - 1]
        m_t = mask_ref[t]                         # (B, 1)  1.0 = valid token

        # gold-path increments (batched, no scalar reads)
        row_sel = jnp.dot(oh_p, trans, preferred_element_type=jnp.float32)
        trans_sc = jnp.sum(row_sel * oh_t, axis=-1, keepdims=True)   # (B, 1)
        emit_sc = jnp.sum(e_t * oh_t, axis=-1, keepdims=True)        # (B, 1)
        score = score + m_t * (trans_sc + emit_sc)
        last_oh = jnp.where(m_t > 0, oh_t, last_oh)

        # forward recursion: alpha'_j = logsumexp_i(alpha_i + trans_ij) + e_j
        m_a = jnp.max(alpha, axis=-1, keepdims=True)                 # (B, 1)
        z = jnp.dot(jnp.exp(alpha - m_a), exp_trans,
                    preferred_element_type=jnp.float32)              # (B, L)
        new_alpha = m_a + cmax + jnp.log(jnp.maximum(z, 1e-30)) + e_t
        alpha = jnp.where(m_t > 0, new_alpha, alpha)
        return alpha, score, last_oh

    alpha, score, last_oh = jax.lax.fori_loop(1, S, body, (alpha0, score0, oh0))

    gold = score + jnp.sum(end * last_oh, axis=-1, keepdims=True)    # (B, 1)
    fin = alpha + end
    mx = jnp.max(fin, axis=-1, keepdims=True)
    logz = mx + jnp.log(jnp.sum(jnp.exp(fin - mx), axis=-1, keepdims=True))
    out_ref[...] = logz - gold                                       # (B, 1)


def crf_nll_pallas(emis_t, oh_t, maskf, trans_p, start_p, end_p):
    """emis_t/oh_t: (2, S, B, LPAD); maskf: (S, B, 1); CRF params stacked and
    padded to LPAD.  Returns per-row NLL of shape (2, B, 1)."""
    NLVL, S, B, L = emis_t.shape
    grid_spec = pltpu.PrefetchScalarGridSpec(
        num_scalar_prefetch=0,
        grid=(NLVL,),
        in_specs=[
            pl.BlockSpec((None, S, B, L), lambda l: (l, 0, 0, 0)),
            pl.BlockSpec((None, S, B, L), lambda l: (l, 0, 0, 0)),
            pl.BlockSpec((S, B, 1), lambda l: (0, 0, 0)),
            pl.BlockSpec((None, L, L), lambda l: (l, 0, 0)),
            pl.BlockSpec((None, 1, L), lambda l: (l, 0, 0)),
            pl.BlockSpec((None, 1, L), lambda l: (l, 0, 0)),
        ],
        out_specs=pl.BlockSpec((None, B, 1), lambda l: (l, 0, 0)),
    )
    return pl.pallas_call(
        functools.partial(_crf_kernel, S=S),
        out_shape=jax.ShapeDtypeStruct((NLVL, B, 1), jnp.float32),
        grid_spec=grid_spec,
        compiler_params=pltpu.CompilerParams(
            dimension_semantics=("parallel",)),
    )(emis_t, oh_t, maskf, trans_p, start_p, end_p)


# -----------------------------------------------------------------------------
# Plain-JAX glue
# -----------------------------------------------------------------------------
def embed(p, input_ids, token_type_ids):
    B, S = input_ids.shape
    x = (p["word_emb"][input_ids]
         + p["pos_emb"][jnp.arange(S)][None, :, :]
         + p["type_emb"][token_type_ids])
    mu = x.mean(-1, keepdims=True)
    var = ((x - mu) ** 2).mean(-1, keepdims=True)
    x = (x - mu) * jax.lax.rsqrt(var + 1e-12) * p["emb_ln_g"] + p["emb_ln_b"]
    return x.astype(jnp.float32)


def make_attention_bias(attention_mask):
    """Block-diagonal (B*S, B*S) additive bias: token i attends only to
    non-padded tokens of its own batch row (equivalent to per-row attention)."""
    B, S = attention_mask.shape
    valid = attention_mask.reshape(-1).astype(jnp.float32)          # (R,)
    bid = jnp.repeat(jnp.arange(B, dtype=jnp.int32), S)             # (R,)
    keep = (bid[:, None] == bid[None, :]) & (valid[None, :] > 0)
    return jnp.where(keep, 0.0, NEG).astype(jnp.float32)            # (R, R)


def _pad_cols(a, width):
    return jnp.zeros(a.shape[:-1] + (width,), a.dtype).at[..., :a.shape[-1]].set(a)


def _pad_crf(trans, start, end, width):
    L = trans.shape[0]
    tp = jnp.full((width, width), NEG, jnp.float32).at[:L, :L].set(trans)
    sp = jnp.full((1, width), NEG, jnp.float32).at[:, :L].set(start)
    ep = jnp.full((1, width), NEG, jnp.float32).at[:, :L].set(end)
    return tp, sp, ep


def stack_levels(p1, p2):
    """Stack both levels' weights along a leading axis (classifier and CRF
    tensors are padded to LPAD so the two levels share one shape)."""
    def stk(f):
        return jnp.stack([f(p1), f(p2)], axis=0)

    w = dict(
        wqkv=stk(lambda p: jnp.concatenate([p["wq"], p["wk"], p["wv"]], axis=1)),
        bqkv=stk(lambda p: jnp.concatenate([p["bq"], p["bk"], p["bv"]], axis=1)),
        wo=stk(lambda p: p["wo"]), bo=stk(lambda p: p["bo"]),
        ln1_g=stk(lambda p: p["ln1_g"]), ln1_b=stk(lambda p: p["ln1_b"]),
        w1=stk(lambda p: p["w1"]), b1=stk(lambda p: p["b1"]),
        w2=stk(lambda p: p["w2"]), b2=stk(lambda p: p["b2"]),
        ln2_g=stk(lambda p: p["ln2_g"]), ln2_b=stk(lambda p: p["ln2_b"]),
        wc=stk(lambda p: _pad_cols(p["wc"], LPAD)),
        bc=stk(lambda p: _pad_cols(p["bc"], LPAD)),
    )
    crf1 = _pad_crf(p1["crf_trans"], p1["crf_start"], p1["crf_end"], LPAD)
    crf2 = _pad_crf(p2["crf_trans"], p2["crf_start"], p2["crf_end"], LPAD)
    trans_p, start_p, end_p = (jnp.stack(z, axis=0) for z in zip(crf1, crf2))
    return w, (trans_p, start_p, end_p)


# TODO(synk): Viterbi backtracking is sequential scalar DP with data-dependent
# gathers; kept in plain JAX (lax.scan) rather than a Pallas kernel.
def viterbi_decode(emissions, mask, trans, start, end):
    B, S, L = emissions.shape
    mask_b = mask.astype(bool)
    score = start[0][None, :] + emissions[:, 0]               # (B, L)

    def step(score, inp):
        e_t, m_t = inp
        cand = score[:, :, None] + trans[None, :, :]          # (B, L, L)
        best = jnp.max(cand, axis=1) + e_t
        bp = jnp.argmax(cand, axis=1).astype(jnp.int32)
        bp = jnp.where(m_t[:, None], bp,
                       jnp.broadcast_to(jnp.arange(L, dtype=jnp.int32)[None, :],
                                        bp.shape))
        score = jnp.where(m_t[:, None], best, score)
        return score, bp

    es = jnp.swapaxes(emissions[:, 1:], 0, 1)                 # (S-1, B, L)
    ms = jnp.swapaxes(mask_b[:, 1:], 0, 1)                    # (S-1, B)
    score, bps = jax.lax.scan(step, score, (es, ms))
    score = score + end[0][None, :]
    last = jnp.argmax(score, axis=-1).astype(jnp.int32)       # (B,)

    def back(tag, bp_t):
        prev = jnp.take_along_axis(bp_t, tag[:, None], axis=1)[:, 0]
        return prev, tag

    tag0, tags_rest = jax.lax.scan(back, last, bps, reverse=True)
    tags = jnp.concatenate([tag0[:, None], jnp.swapaxes(tags_rest, 0, 1)], axis=1)
    return tags                                               # (B, S) int32


def hierarchical_forward(p1, p2, input_ids, token_type_ids=None,
                         attention_mask=None, level1_labels=None,
                         level2_labels=None):
    if token_type_ids is None:
        token_type_ids = jnp.zeros_like(input_ids)
    if attention_mask is None:
        attention_mask = jnp.ones_like(input_ids)
    B, S = input_ids.shape
    L1 = p1["wc"].shape[1]
    L2 = p2["wc"].shape[1]

    w, (trans_p, start_p, end_p) = stack_levels(p1, p2)

    xs = jnp.stack([embed(p1, input_ids, token_type_ids),
                    embed(p2, input_ids, token_type_ids)], axis=0)  # (2,B,S,H)
    xs = xs.reshape(2, B * S, -1)                                   # (2,R,H)
    bias = make_attention_bias(attention_mask)                      # (R,R)

    emis = encoder_classifier_pallas(xs, bias, w)                   # (2,R,LPAD)
    emis = emis.reshape(2, B, S, LPAD)
    e1 = emis[0, :, :, :L1]
    e2 = emis[1, :, :, :L2]

    if level1_labels is not None and level2_labels is not None:
        emis_t = jnp.transpose(emis, (0, 2, 1, 3))                  # (2,S,B,LPAD)
        oh = jnp.stack(
            [jax.nn.one_hot(level1_labels, LPAD, dtype=jnp.float32),
             jax.nn.one_hot(level2_labels, LPAD, dtype=jnp.float32)], axis=0)
        oh_t = jnp.transpose(oh, (0, 2, 1, 3))                      # (2,S,B,LPAD)
        maskf = attention_mask.astype(jnp.float32).T[:, :, None]    # (S,B,1)
        nll = crf_nll_pallas(emis_t, oh_t, maskf, trans_p, start_p, end_p)
        total_loss = jnp.mean(nll[0]) + jnp.mean(nll[1])            # mean-per-level
        return total_loss, (e1, e2)

    t1 = viterbi_decode(e1, attention_mask,
                        p1["crf_trans"], p1["crf_start"], p1["crf_end"])
    t2 = viterbi_decode(e2, attention_mask,
                        p2["crf_trans"], p2["crf_start"], p2["crf_end"])
    return (e1, e2), (t1, t2)


# -----------------------------------------------------------------------------
# Deterministic parameter init
# -----------------------------------------------------------------------------
def init_level_params(key, num_labels, vocab=64, H=32, F=64, max_pos=16,
                      type_vocab=2):
    ks = jax.random.split(key, 16)

    def w(k, shape, scale=0.02):
        return (scale * jax.random.normal(k, shape)).astype(jnp.float32)

    return dict(
        word_emb=w(ks[0], (vocab, H)),
        pos_emb=w(ks[1], (max_pos, H)),
        type_emb=w(ks[2], (type_vocab, H)),
        emb_ln_g=jnp.ones((H,), jnp.float32),
        emb_ln_b=jnp.zeros((H,), jnp.float32),
        wq=w(ks[3], (H, H)), bq=jnp.zeros((1, H), jnp.float32),
        wk=w(ks[4], (H, H)), bk=jnp.zeros((1, H), jnp.float32),
        wv=w(ks[5], (H, H)), bv=jnp.zeros((1, H), jnp.float32),
        wo=w(ks[6], (H, H)), bo=jnp.zeros((1, H), jnp.float32),
        ln1_g=jnp.ones((1, H), jnp.float32), ln1_b=jnp.zeros((1, H), jnp.float32),
        w1=w(ks[7], (H, F)), b1=jnp.zeros((1, F), jnp.float32),
        w2=w(ks[8], (F, H)), b2=jnp.zeros((1, H), jnp.float32),
        ln2_g=jnp.ones((1, H), jnp.float32), ln2_b=jnp.zeros((1, H), jnp.float32),
        wc=w(ks[9], (H, num_labels)), bc=jnp.zeros((1, num_labels), jnp.float32),
        crf_trans=w(ks[10], (num_labels, num_labels), 0.1),
        crf_start=w(ks[11], (1, num_labels), 0.1),
        crf_end=w(ks[12], (1, num_labels), 0.1),
    )


if __name__ == "__main__":
    B, S, H = 2, 8, 32
    VOCAB, L1, L2 = 64, 5, 9

    key = jax.random.PRNGKey(0)
    k1, k2, kid, kl1, kl2 = jax.random.split(key, 5)
    p1 = init_level_params(k1, L1, vocab=VOCAB, H=H)
    p2 = init_level_params(k2, L2, vocab=VOCAB, H=H)

    input_ids = jax.random.randint(kid, (B, S), 0, VOCAB, dtype=jnp.int32)
    token_type_ids = jnp.zeros((B, S), jnp.int32)
    attention_mask = jnp.ones((B, S), jnp.int32).at[1, S - 2:].set(0)
    level1_labels = jax.random.randint(kl1, (B, S), 0, L1, dtype=jnp.int32)
    level2_labels = jax.random.randint(kl2, (B, S), 0, L2, dtype=jnp.int32)

    # Training path: total_loss, (level1_emissions, level2_emissions)
    loss, (e1, e2) = hierarchical_forward(p1, p2, input_ids, token_type_ids,
                                          attention_mask, level1_labels,
                                          level2_labels)
    jax.block_until_ready((loss, e1, e2))

    # Inference path: (emissions, emissions), (tags, tags)
    (e1i, e2i), (t1, t2) = hierarchical_forward(p1, p2, input_ids,
                                                token_type_ids, attention_mask)
    jax.block_until_ready((e1i, e2i, t1, t2))

    print("KERNEL_OK")
</pallas_src>

<mosaic_0001>
module attributes {stable_mosaic.version = 11 : i64} {
  func.func @_encoder_kernel(%arg0: i32, %arg1: memref<1x16x32xf32, #tpu.memory_space<vmem>>, %arg2: memref<16x16xf32, #tpu.memory_space<vmem>>, %arg3: memref<1x32x96xf32, #tpu.memory_space<vmem>>, %arg4: memref<1x1x96xf32, #tpu.memory_space<vmem>>, %arg5: memref<1x32x32xf32, #tpu.memory_space<vmem>>, %arg6: memref<1x1x32xf32, #tpu.memory_space<vmem>>, %arg7: memref<1x1x32xf32, #tpu.memory_space<vmem>>, %arg8: memref<1x1x32xf32, #tpu.memory_space<vmem>>, %arg9: memref<1x32x64xf32, #tpu.memory_space<vmem>>, %arg10: memref<1x1x64xf32, #tpu.memory_space<vmem>>, %arg11: memref<1x64x32xf32, #tpu.memory_space<vmem>>, %arg12: memref<1x1x32xf32, #tpu.memory_space<vmem>>, %arg13: memref<1x1x32xf32, #tpu.memory_space<vmem>>, %arg14: memref<1x1x32xf32, #tpu.memory_space<vmem>>, %arg15: memref<1x32x128xf32, #tpu.memory_space<vmem>>, %arg16: memref<1x1x128xf32, #tpu.memory_space<vmem>>, %arg17: memref<1x16x128xf32, #tpu.memory_space<vmem>>) attributes {dimension_semantics = [#tpu.dimension_semantics<parallel>], iteration_bounds = array<i64: 2>, scalar_prefetch = 0 : i64, scratch_operands = 0 : i64, tpu.core_type = #tpu.core_type<tc>, window_params = [{transform_indices = @transform_0, window_bounds = array<i64: 1, 16, 32>}, {pipeline_mode = #tpu.pipeline_mode<synchronous>, transform_indices = @transform_1, window_bounds = array<i64: 16, 16>}, {transform_indices = @transform_2, window_bounds = array<i64: 1, 32, 96>}, {transform_indices = @transform_3, window_bounds = array<i64: 1, 1, 96>}, {transform_indices = @transform_4, window_bounds = array<i64: 1, 32, 32>}, {transform_indices = @transform_5, window_bounds = array<i64: 1, 1, 32>}, {transform_indices = @transform_6, window_bounds = array<i64: 1, 1, 32>}, {transform_indices = @transform_7, window_bounds = array<i64: 1, 1, 32>}, {transform_indices = @transform_8, window_bounds = array<i64: 1, 32, 64>}, {transform_indices = @transform_9, window_bounds = array<i64: 1, 1, 64>}, {transform_indices = @transform_10, window_bounds = array<i64: 1, 64, 32>}, {transform_indices = @transform_11, window_bounds = array<i64: 1, 1, 32>}, {transform_indices = @transform_12, window_bounds = array<i64: 1, 1, 32>}, {transform_indices = @transform_13, window_bounds = array<i64: 1, 1, 32>}, {transform_indices = @transform_14, window_bounds = array<i64: 1, 32, 128>}, {transform_indices = @transform_15, window_bounds = array<i64: 1, 1, 128>}, {transform_indices = @transform_16, window_bounds = array<i64: 1, 16, 128>}]} {
    %c0 = arith.constant 0 : index
    %c0_0 = arith.constant 0 : index
    %c0_1 = arith.constant 0 : index
    %0 = vector.load %arg1[%c0, %c0_0, %c0_1] : memref<1x16x32xf32, #tpu.memory_space<vmem>>, vector<1x16x32xf32>
    %1 = vector.shape_cast %0 : vector<1x16x32xf32> to vector<16x32xf32>
    %c0_2 = arith.constant 0 : index
    %c0_3 = arith.constant 0 : index
    %2 = vector.load %arg2[%c0_2, %c0_3] : memref<16x16xf32, #tpu.memory_space<vmem>>, vector<16x16xf32>
    %c0_4 = arith.constant 0 : index
    %c0_5 = arith.constant 0 : index
    %c0_6 = arith.constant 0 : index
    %3 = vector.load %arg3[%c0_4, %c0_5, %c0_6] : memref<1x32x96xf32, #tpu.memory_space<vmem>>, vector<1x32x96xf32>
    %4 = vector.shape_cast %3 : vector<1x32x96xf32> to vector<32x96xf32>
    %cst = arith.constant dense<0.000000e+00> : vector<16x96xf32>
    %5 = tpu.matmul %1, %4, %cst {dimension_numbers = #tpu.dot_dimension_numbers<[1], [0], [0], [1], [0, 0, 1, 1], [], []>} : vector<16x32xf32>, vector<32x96xf32>, vector<16x96xf32> -> vector<16x96xf32>
    %c0_7 = arith.constant 0 : index
    %c0_8 = arith.constant 0 : index
    %c0_9 = arith.constant 0 : index
    %6 = vector.load %arg4[%c0_7, %c0_8, %c0_9] : memref<1x1x96xf32, #tpu.memory_space<vmem>>, vector<1x1x96xf32>
    %7 = vector.shape_cast %6 : vector<1x1x96xf32> to vector<1x96xf32>
    %8 = vector.broadcast %7 : vector<1x96xf32> to vector<16x96xf32>
    %9 = arith.addf %5, %8 : vector<16x96xf32>
    %10 = vector.extract_strided_slice %9 {offsets = [0, 0], sizes = [16, 32], strides = [1, 1]} : vector<16x96xf32> to vector<16x32xf32>
    %11 = vector.extract_strided_slice %9 {offsets = [0, 32], sizes = [16, 32], strides = [1, 1]} : vector<16x96xf32> to vector<16x32xf32>
    %12 = vector.extract_strided_slice %9 {offsets = [0, 64], sizes = [16, 32], strides = [1, 1]} : vector<16x96xf32> to vector<16x32xf32>
    %13 = tpu.iota {dimensions = array<i32: 1>} : vector<1x32xi32>
    %cst_10 = arith.constant 0.000000e+00 : f32
    %14 = vector.broadcast %cst_10 : f32 to vector<16x32xf32>
    %c0_i32 = arith.constant 0 : i32
    %15 = vector.broadcast %c0_i32 : i32 to vector<1x32xi32>
    %16 = arith.cmpi sge, %13, %15 : vector<1x32xi32>
    %c8_i32 = arith.constant 8 : i32
    %17 = vector.broadcast %c8_i32 : i32 to vector<1x32xi32>
    %18 = arith.cmpi slt, %13, %17 : vector<1x32xi32>
    %19 = arith.andi %16, %18 : vector<1x32xi1>
    %20 = arith.extui %19 : vector<1x32xi1> to vector<1x32xi32>
    %21 = arith.sitofp %20 : vector<1x32xi32> to vector<1x32xf32>
    %22 = vector.broadcast %21 : vector<1x32xf32> to vector<16x32xf32>
    %23 = arith.mulf %10, %22 : vector<16x32xf32>
    %cst_11 = arith.constant dense<0.000000e+00> : vector<16x16xf32>
    %24 = tpu.matmul %23, %11, %cst_11 {dimension_numbers = #tpu.dot_dimension_numbers<[1], [1], [0], [0], [0, 0, 1, 0], [], []>} : vector<16x32xf32>, vector<16x32xf32>, vector<16x16xf32> -> vector<16x16xf32>
    %cst_12 = arith.constant 0.353553385 : f32
    %25 = vector.broadcast %cst_12 : f32 to vector<16x16xf32>
    %26 = arith.mulf %24, %25 : vector<16x16xf32>
    %27 = arith.addf %26, %2 : vector<16x16xf32>
    %cst_13 = arith.constant dense<0xFF800000> : vector<16xf32>
    %28 = vector.multi_reduction <maximumf>, %27, %cst_13 [1] : vector<16x16xf32> to vector<16xf32>
    %29 = vector.shape_cast %28 : vector<16xf32> to vector<16x1xf32>
    %30 = vector.broadcast %29 : vector<16x1xf32> to vector<16x16xf32>
    %31 = arith.subf %27, %30 : vector<16x16xf32>
    %32 = math.exp %31 : vector<16x16xf32>
    %cst_14 = arith.constant dense<0.000000e+00> : vector<16xf32>
    %33 = vector.multi_reduction <add>, %32, %cst_14 [1] : vector<16x16xf32> to vector<16xf32>
    %34 = vector.shape_cast %33 : vector<16xf32> to vector<16x1xf32>
    %35 = tpu.reciprocal %34 {approx = true} : vector<16x1xf32> -> vector<16x1xf32>
    %36 = vector.broadcast %35 : vector<16x1xf32> to vector<16x16xf32>
    %37 = arith.mulf %32, %36 : vector<16x16xf32>
    %38 = vector.broadcast %21 : vector<1x32xf32> to vector<16x32xf32>
    %39 = arith.mulf %12, %38 : vector<16x32xf32>
    %cst_15 = arith.constant dense<0.000000e+00> : vector<16x32xf32>
    %40 = tpu.matmul %37, %39, %cst_15 {dimension_numbers = #tpu.dot_dimension_numbers<[1], [0], [0], [1], [0, 0, 1, 1], [], []>} : vector<16x16xf32>, vector<16x32xf32>, vector<16x32xf32> -> vector<16x32xf32>
    %41 = arith.addf %14, %40 : vector<16x32xf32>
    %c8_i32_16 = arith.constant 8 : i32
    %42 = vector.broadcast %c8_i32_16 : i32 to vector<1x32xi32>
    %43 = arith.cmpi sge, %13, %42 : vector<1x32xi32>
    %c16_i32 = arith.constant 16 : i32
    %44 = vector.broadcast %c16_i32 : i32 to vector<1x32xi32>
    %45 = arith.cmpi slt, %13, %44 : vector<1x32xi32>
    %46 = arith.andi %43, %45 : vector<1x32xi1>
    %47 = arith.extui %46 : vector<1x32xi1> to vector<1x32xi32>
    %48 = arith.sitofp %47 : vector<1x32xi32> to vector<1x32xf32>
    %49 = vector.broadcast %48 : vector<1x32xf32> to vector<16x32xf32>
    %50 = arith.mulf %10, %49 : vector<16x32xf32>
    %cst_17 = arith.constant dense<0.000000e+00> : vector<16x16xf32>
    %51 = tpu.matmul %50, %11, %cst_17 {dimension_numbers = #tpu.dot_dimension_numbers<[1], [1], [0], [0], [0, 0, 1, 0], [], []>} : vector<16x32xf32>, vector<16x32xf32>, vector<16x16xf32> -> vector<16x16xf32>
    %cst_18 = arith.constant 0.353553385 : f32
    %52 = vector.broadcast %cst_18 : f32 to vector<16x16xf32>
    %53 = arith.mulf %51, %52 : vector<16x16xf32>
    %54 = arith.addf %53, %2 : vector<16x16xf32>
    %cst_19 = arith.constant dense<0xFF800000> : vector<16xf32>
    %55 = vector.multi_reduction <maximumf>, %54, %cst_19 [1] : vector<16x16xf32> to vector<16xf32>
    %56 = vector.shape_cast %55 : vector<16xf32> to vector<16x1xf32>
    %57 = vector.broadcast %56 : vector<16x1xf32> to vector<16x16xf32>
    %58 = arith.subf %54, %57 : vector<16x16xf32>
    %59 = math.exp %58 : vector<16x16xf32>
    %cst_20 = arith.constant dense<0.000000e+00> : vector<16xf32>
    %60 = vector.multi_reduction <add>, %59, %cst_20 [1] : vector<16x16xf32> to vector<16xf32>
    %61 = vector.shape_cast %60 : vector<16xf32> to vector<16x1xf32>
    %62 = tpu.reciprocal %61 {approx = true} : vector<16x1xf32> -> vector<16x1xf32>
    %63 = vector.broadcast %62 : vector<16x1xf32> to vector<16x16xf32>
    %64 = arith.mulf %59, %63 : vector<16x16xf32>
    %65 = vector.broadcast %48 : vector<1x32xf32> to vector<16x32xf32>
    %66 = arith.mulf %12, %65 : vector<16x32xf32>
    %cst_21 = arith.constant dense<0.000000e+00> : vector<16x32xf32>
    %67 = tpu.matmul %64, %66, %cst_21 {dimension_numbers = #tpu.dot_dimension_numbers<[1], [0], [0], [1], [0, 0, 1, 1], [], []>} : vector<16x16xf32>, vector<16x32xf32>, vector<16x32xf32> -> vector<16x32xf32>
    %68 = arith.addf %41, %67 : vector<16x32xf32>
    %c16_i32_22 = arith.constant 16 : i32
    %69 = vector.broadcast %c16_i32_22 : i32 to vector<1x32xi32>
    %70 = arith.cmpi sge, %13, %69 : vector<1x32xi32>
    %c24_i32 = arith.constant 24 : i32
    %71 = vector.broadcast %c24_i32 : i32 to vector<1x32xi32>
    %72 = arith.cmpi slt, %13, %71 : vector<1x32xi32>
    %73 = arith.andi %70, %72 : vector<1x32xi1>
    %74 = arith.extui %73 : vector<1x32xi1> to vector<1x32xi32>
    %75 = arith.sitofp %74 : vector<1x32xi32> to vector<1x32xf32>
    %76 = vector.broadcast %75 : vector<1x32xf32> to vector<16x32xf32>
    %77 = arith.mulf %10, %76 : vector<16x32xf32>
    %cst_23 = arith.constant dense<0.000000e+00> : vector<16x16xf32>
    %78 = tpu.matmul %77, %11, %cst_23 {dimension_numbers = #tpu.dot_dimension_numbers<[1], [1], [0], [0], [0, 0, 1, 0], [], []>} : vector<16x32xf32>, vector<16x32xf32>, vector<16x16xf32> -> vector<16x16xf32>
    %cst_24 = arith.constant 0.353553385 : f32
    %79 = vector.broadcast %cst_24 : f32 to vector<16x16xf32>
    %80 = arith.mulf %78, %79 : vector<16x16xf32>
    %81 = arith.addf %80, %2 : vector<16x16xf32>
    %cst_25 = arith.constant dense<0xFF800000> : vector<16xf32>
    %82 = vector.multi_reduction <maximumf>, %81, %cst_25 [1] : vector<16x16xf32> to vector<16xf32>
    %83 = vector.shape_cast %82 : vector<16xf32> to vector<16x1xf32>
    %84 = vector.broadcast %83 : vector<16x1xf32> to vector<16x16xf32>
    %85 = arith.subf %81, %84 : vector<16x16xf32>
    %86 = math.exp %85 : vector<16x16xf32>
    %cst_26 = arith.constant dense<0.000000e+00> : vector<16xf32>
    %87 = vector.multi_reduction <add>, %86, %cst_26 [1] : vector<16x16xf32> to vector<16xf32>
    %88 = vector.shape_cast %87 : vector<16xf32> to vector<16x1xf32>
    %89 = tpu.reciprocal %88 {approx = true} : vector<16x1xf32> -> vector<16x1xf32>
    %90 = vector.broadcast %89 : vector<16x1xf32> to vector<16x16xf32>
    %91 = arith.mulf %86, %90 : vector<16x16xf32>
    %92 = vector.broadcast %75 : vector<1x32xf32> to vector<16x32xf32>
    %93 = arith.mulf %12, %92 : vector<16x32xf32>
    %cst_27 = arith.constant dense<0.000000e+00> : vector<16x32xf32>
    %94 = tpu.matmul %91, %93, %cst_27 {dimension_numbers = #tpu.dot_dimension_numbers<[1], [0], [0], [1], [0, 0, 1, 1], [], []>} : vector<16x16xf32>, vector<16x32xf32>, vector<16x32xf32> -> vector<16x32xf32>
    %95 = arith.addf %68, %94 : vector<16x32xf32>
    %c24_i32_28 = arith.constant 24 : i32
    %96 = vector.broadcast %c24_i32_28 : i32 to vector<1x32xi32>
    %97 = arith.cmpi sge, %13, %96 : vector<1x32xi32>
    %c32_i32 = arith.constant 32 : i32
    %98 = vector.broadcast %c32_i32 : i32 to vector<1x32xi32>
    %99 = arith.cmpi slt, %13, %98 : vector<1x32xi32>
    %100 = arith.andi %97, %99 : vector<1x32xi1>
    %101 = arith.extui %100 : vector<1x32xi1> to vector<1x32xi32>
    %102 = arith.sitofp %101 : vector<1x32xi32> to vector<1x32xf32>
    %103 = vector.broadcast %102 : vector<1x32xf32> to vector<16x32xf32>
    %104 = arith.mulf %10, %103 : vector<16x32xf32>
    %cst_29 = arith.constant dense<0.000000e+00> : vector<16x16xf32>
    %105 = tpu.matmul %104, %11, %cst_29 {dimension_numbers = #tpu.dot_dimension_numbers<[1], [1], [0], [0], [0, 0, 1, 0], [], []>} : vector<16x32xf32>, vector<16x32xf32>, vector<16x16xf32> -> vector<16x16xf32>
    %cst_30 = arith.constant 0.353553385 : f32
    %106 = vector.broadcast %cst_30 : f32 to vector<16x16xf32>
    %107 = arith.mulf %105, %106 : vector<16x16xf32>
    %108 = arith.addf %107, %2 : vector<16x16xf32>
    %cst_31 = arith.constant dense<0xFF800000> : vector<16xf32>
    %109 = vector.multi_reduction <maximumf>, %108, %cst_31 [1] : vector<16x16xf32> to vector<16xf32>
    %110 = vector.shape_cast %109 : vector<16xf32> to vector<16x1xf32>
    %111 = vector.broadcast %110 : vector<16x1xf32> to vector<16x16xf32>
    %112 = arith.subf %108, %111 : vector<16x16xf32>
    %113 = math.exp %112 : vector<16x16xf32>
    %cst_32 = arith.constant dense<0.000000e+00> : vector<16xf32>
    %114 = vector.multi_reduction <add>, %113, %cst_32 [1] : vector<16x16xf32> to vector<16xf32>
    %115 = vector.shape_cast %114 : vector<16xf32> to vector<16x1xf32>
    %116 = tpu.reciprocal %115 {approx = true} : vector<16x1xf32> -> vector<16x1xf32>
    %117 = vector.broadcast %116 : vector<16x1xf32> to vector<16x16xf32>
    %118 = arith.mulf %113, %117 : vector<16x16xf32>
    %119 = vector.broadcast %102 : vector<1x32xf32> to vector<16x32xf32>
    %120 = arith.mulf %12, %119 : vector<16x32xf32>
    %cst_33 = arith.constant dense<0.000000e+00> : vector<16x32xf32>
    %121 = tpu.matmul %118, %120, %cst_33 {dimension_numbers = #tpu.dot_dimension_numbers<[1], [0], [0], [1], [0, 0, 1, 1], [], []>} : vector<16x16xf32>, vector<16x32xf32>, vector<16x32xf32> -> vector<16x32xf32>
    %122 = arith.addf %95, %121 : vector<16x32xf32>
    %c0_34 = arith.constant 0 : index
    %c0_35 = arith.constant 0 : index
    %c0_36 = arith.constant 0 : index
    %123 = vector.load %arg5[%c0_34, %c0_35, %c0_36] : memref<1x32x32xf32, #tpu.memory_space<vmem>>, vector<1x32x32xf32>
    %124 = vector.shape_cast %123 : vector<1x32x32xf32> to vector<32x32xf32>
    %cst_37 = arith.constant dense<0.000000e+00> : vector<16x32xf32>
    %125 = tpu.matmul %122, %124, %cst_37 {dimension_numbers = #tpu.dot_dimension_numbers<[1], [0], [0], [1], [0, 0, 1, 1], [], []>} : vector<16x32xf32>, vector<32x32xf32>, vector<16x32xf32> -> vector<16x32xf32>
    %c0_38 = arith.constant 0 : index
    %c0_39 = arith.constant 0 : index
    %c0_40 = arith.constant 0 : index
    %126 = vector.load %arg6[%c0_38, %c0_39, %c0_40] : memref<1x1x32xf32, #tpu.memory_space<vmem>>, vector<1x1x32xf32>
    %127 = vector.shape_cast %126 : vector<1x1x32xf32> to vector<1x32xf32>
    %128 = vector.broadcast %127 : vector<1x32xf32> to vector<16x32xf32>
    %129 = arith.addf %125, %128 : vector<16x32xf32>
    %130 = arith.addf %1, %129 : vector<16x32xf32>
    %c0_41 = arith.constant 0 : index
    %c0_42 = arith.constant 0 : index
    %c0_43 = arith.constant 0 : index
    %131 = vector.load %arg7[%c0_41, %c0_42, %c0_43] : memref<1x1x32xf32, #tpu.memory_space<vmem>>, vector<1x1x32xf32>
    %132 = vector.shape_cast %131 : vector<1x1x32xf32> to vector<1x32xf32>
    %c0_44 = arith.constant 0 : index
    %c0_45 = arith.constant 0 : index
    %c0_46 = arith.constant 0 : index
    %133 = vector.load %arg8[%c0_44, %c0_45, %c0_46] : memref<1x1x32xf32, #tpu.memory_space<vmem>>, vector<1x1x32xf32>
    %134 = vector.shape_cast %133 : vector<1x1x32xf32> to vector<1x32xf32>
    %cst_47 = arith.constant dense<0.000000e+00> : vector<16xf32>
    %135 = vector.multi_reduction <add>, %130, %cst_47 [1] : vector<16x32xf32> to vector<16xf32>
    %136 = vector.shape_cast %135 : vector<16xf32> to vector<16x1xf32>
    %cst_48 = arith.constant 3.200000e+01 : f32
    %137 = vector.broadcast %cst_48 : f32 to vector<16x1xf32>
    %138 = arith.divf %136, %137 : vector<16x1xf32>
    %139 = vector.broadcast %138 : vector<16x1xf32> to vector<16x32xf32>
    %140 = arith.subf %130, %139 : vector<16x32xf32>
    %141 = arith.mulf %140, %140 : vector<16x32xf32>
    %cst_49 = arith.constant dense<0.000000e+00> : vector<16xf32>
    %142 = vector.multi_reduction <add>, %141, %cst_49 [1] : vector<16x32xf32> to vector<16xf32>
    %143 = vector.shape_cast %142 : vector<16xf32> to vector<16x1xf32>
    %cst_50 = arith.constant 3.200000e+01 : f32
    %144 = vector.broadcast %cst_50 : f32 to vector<16x1xf32>
    %145 = arith.divf %143, %144 : vector<16x1xf32>
    %146 = vector.broadcast %138 : vector<16x1xf32> to vector<16x32xf32>
    %147 = arith.subf %130, %146 : vector<16x32xf32>
    %cst_51 = arith.constant 9.99999996E-13 : f32
    %148 = vector.broadcast %cst_51 : f32 to vector<16x1xf32>
    %149 = arith.addf %145, %148 : vector<16x1xf32>
    %150 = math.rsqrt %149 : vector<16x1xf32>
    %151 = vector.broadcast %150 : vector<16x1xf32> to vector<16x32xf32>
    %152 = arith.mulf %147, %151 : vector<16x32xf32>
    %153 = vector.broadcast %132 : vector<1x32xf32> to vector<16x32xf32>
    %154 = arith.mulf %152, %153 : vector<16x32xf32>
    %155 = vector.broadcast %134 : vector<1x32xf32> to vector<16x32xf32>
    %156 = arith.addf %154, %155 : vector<16x32xf32>
    %c0_52 = arith.constant 0 : index
    %c0_53 = arith.constant 0 : index
    %c0_54 = arith.constant 0 : index
    %157 = vector.load %arg9[%c0_52, %c0_53, %c0_54] : memref<1x32x64xf32, #tpu.memory_space<vmem>>, vector<1x32x64xf32>
    %158 = vector.shape_cast %157 : vector<1x32x64xf32> to vector<32x64xf32>
    %cst_55 = arith.constant dense<0.000000e+00> : vector<16x64xf32>
    %159 = tpu.matmul %156, %158, %cst_55 {dimension_numbers = #tpu.dot_dimension_numbers<[1], [0], [0], [1], [0, 0, 1, 1], [], []>} : vector<16x32xf32>, vector<32x64xf32>, vector<16x64xf32> -> vector<16x64xf32>
    %c0_56 = arith.constant 0 : index
    %c0_57 = arith.constant 0 : index
    %c0_58 = arith.constant 0 : index
    %160 = vector.load %arg10[%c0_56, %c0_57, %c0_58] : memref<1x1x64xf32, #tpu.memory_space<vmem>>, vector<1x1x64xf32>
    %161 = vector.shape_cast %160 : vector<1x1x64xf32> to vector<1x64xf32>
    %162 = vector.broadcast %161 : vector<1x64xf32> to vector<16x64xf32>
    %163 = arith.addf %159, %162 : vector<16x64xf32>
    %164 = arith.mulf %163, %163 : vector<16x64xf32>
    %165 = arith.mulf %163, %164 : vector<16x64xf32>
    %cst_59 = arith.constant 4.471500e-02 : f32
    %166 = vector.broadcast %cst_59 : f32 to vector<16x64xf32>
    %167 = arith.mulf %166, %165 : vector<16x64xf32>
    %168 = arith.addf %163, %167 : vector<16x64xf32>
    %cst_60 = arith.constant 0.797884583 : f32
    %169 = vector.broadcast %cst_60 : f32 to vector<16x64xf32>
    %170 = arith.mulf %169, %168 : vector<16x64xf32>
    %171 = math.tanh %170 : vector<16x64xf32>
    %cst_61 = arith.constant 1.000000e+00 : f32
    %172 = vector.broadcast %cst_61 : f32 to vector<16x64xf32>
    %173 = arith.addf %172, %171 : vector<16x64xf32>
    %cst_62 = arith.constant 5.000000e-01 : f32
    %174 = vector.broadcast %cst_62 : f32 to vector<16x64xf32>
    %175 = arith.mulf %174, %173 : vector<16x64xf32>
    %176 = arith.mulf %163, %175 : vector<16x64xf32>
    %c0_63 = arith.constant 0 : index
    %c0_64 = arith.constant 0 : index
    %c0_65 = arith.constant 0 : index
    %177 = vector.load %arg11[%c0_63, %c0_64, %c0_65] : memref<1x64x32xf32, #tpu.memory_space<vmem>>, vector<1x64x32xf32>
    %178 = vector.shape_cast %177 : vector<1x64x32xf32> to vector<64x32xf32>
    %cst_66 = arith.constant dense<0.000000e+00> : vector<16x32xf32>
    %179 = tpu.matmul %176, %178, %cst_66 {dimension_numbers = #tpu.dot_dimension_numbers<[1], [0], [0], [1], [0, 0, 1, 1], [], []>} : vector<16x64xf32>, vector<64x32xf32>, vector<16x32xf32> -> vector<16x32xf32>
    %c0_67 = arith.constant 0 : index
    %c0_68 = arith.constant 0 : index
    %c0_69 = arith.constant 0 : index
    %180 = vector.load %arg12[%c0_67, %c0_68, %c0_69] : memref<1x1x32xf32, #tpu.memory_space<vmem>>, vector<1x1x32xf32>
    %181 = vector.shape_cast %180 : vector<1x1x32xf32> to vector<1x32xf32>
    %182 = vector.broadcast %181 : vector<1x32xf32> to vector<16x32xf32>
    %183 = arith.addf %179, %182 : vector<16x32xf32>
    %184 = arith.addf %156, %183 : vector<16x32xf32>
    %c0_70 = arith.constant 0 : index
    %c0_71 = arith.constant 0 : index
    %c0_72 = arith.constant 0 : index
    %185 = vector.load %arg13[%c0_70, %c0_71, %c0_72] : memref<1x1x32xf32, #tpu.memory_space<vmem>>, vector<1x1x32xf32>
    %186 = vector.shape_cast %185 : vector<1x1x32xf32> to vector<1x32xf32>
    %c0_73 = arith.constant 0 : index
    %c0_74 = arith.constant 0 : index
    %c0_75 = arith.constant 0 : index
    %187 = vector.load %arg14[%c0_73, %c0_74, %c0_75] : memref<1x1x32xf32, #tpu.memory_space<vmem>>, vector<1x1x32xf32>
    %188 = vector.shape_cast %187 : vector<1x1x32xf32> to vector<1x32xf32>
    %cst_76 = arith.constant dense<0.000000e+00> : vector<16xf32>
    %189 = vector.multi_reduction <add>, %184, %cst_76 [1] : vector<16x32xf32> to vector<16xf32>
    %190 = vector.shape_cast %189 : vector<16xf32> to vector<16x1xf32>
    %cst_77 = arith.constant 3.200000e+01 : f32
    %191 = vector.broadcast %cst_77 : f32 to vector<16x1xf32>
    %192 = arith.divf %190, %191 : vector<16x1xf32>
    %193 = vector.broadcast %192 : vector<16x1xf32> to vector<16x32xf32>
    %194 = arith.subf %184, %193 : vector<16x32xf32>
    %195 = arith.mulf %194, %194 : vector<16x32xf32>
    %cst_78 = arith.constant dense<0.000000e+00> : vector<16xf32>
    %196 = vector.multi_reduction <add>, %195, %cst_78 [1] : vector<16x32xf32> to vector<16xf32>
    %197 = vector.shape_cast %196 : vector<16xf32> to vector<16x1xf32>
    %cst_79 = arith.constant 3.200000e+01 : f32
    %198 = vector.broadcast %cst_79 : f32 to vector<16x1xf32>
    %199 = arith.divf %197, %198 : vector<16x1xf32>
    %200 = vector.broadcast %192 : vector<16x1xf32> to vector<16x32xf32>
    %201 = arith.subf %184, %200 : vector<16x32xf32>
    %cst_80 = arith.constant 9.99999996E-13 : f32
    %202 = vector.broadcast %cst_80 : f32 to vector<16x1xf32>
    %203 = arith.addf %199, %202 : vector<16x1xf32>
    %204 = math.rsqrt %203 : vector<16x1xf32>
    %205 = vector.broadcast %204 : vector<16x1xf32> to vector<16x32xf32>
    %206 = arith.mulf %201, %205 : vector<16x32xf32>
    %207 = vector.broadcast %186 : vector<1x32xf32> to vector<16x32xf32>
    %208 = arith.mulf %206, %207 : vector<16x32xf32>
    %209 = vector.broadcast %188 : vector<1x32xf32> to vector<16x32xf32>
    %210 = arith.addf %208, %209 : vector<16x32xf32>
    %c0_81 = arith.constant 0 : index
    %c0_82 = arith.constant 0 : index
    %c0_83 = arith.constant 0 : index
    %211 = vector.load %arg15[%c0_81, %c0_82, %c0_83] : memref<1x32x128xf32, #tpu.memory_space<vmem>>, vector<1x32x128xf32>
    %212 = vector.shape_cast %211 : vector<1x32x128xf32> to vector<32x128xf32>
    %cst_84 = arith.constant dense<0.000000e+00> : vector<16x128xf32>
    %213 = tpu.matmul %210, %212, %cst_84 {dimension_numbers = #tpu.dot_dimension_numbers<[1], [0], [0], [1], [0, 0, 1, 1], [], []>} : vector<16x32xf32>, vector<32x128xf32>, vector<16x128xf32> -> vector<16x128xf32>
    %c0_85 = arith.constant 0 : index
    %c0_86 = arith.constant 0 : index
    %c0_87 = arith.constant 0 : index
    %214 = vector.load %arg16[%c0_85, %c0_86, %c0_87] : memref<1x1x128xf32, #tpu.memory_space<vmem>>, vector<1x1x128xf32>
    %215 = vector.shape_cast %214 : vector<1x1x128xf32> to vector<1x128xf32>
    %216 = vector.broadcast %215 : vector<1x128xf32> to vector<16x128xf32>
    %217 = arith.addf %213, %216 : vector<16x128xf32>
    %c0_88 = arith.constant 0 : index
    %c0_89 = arith.constant 0 : index
    %c0_90 = arith.constant 0 : index
    %218 = vector.load %arg17[%c0_88, %c0_89, %c0_90] : memref<1x16x128xf32, #tpu.memory_space<vmem>>, vector<1x16x128xf32>
    %219 = vector.shape_cast %218 : vector<1x16x128xf32> to vector<16x128xf32>
    %220 = vector.shape_cast %217 : vector<16x128xf32> to vector<1x16x128xf32>
    tpu.vector_store %arg17[%c0_88, %c0_89, %c0_90], %220 {strides = array<i32>} : memref<1x16x128xf32, #tpu.memory_space<vmem>>, vector<1x16x128xf32>,
    return
  }
  func.func @transform_0(%arg0: i32) -> (i32, i32, i32) {
    %c0_i32 = arith.constant 0 : i32
    %c0_i32_0 = arith.constant 0 : i32
    %c0_i32_1 = arith.constant 0 : i32
    return %arg0, %c0_i32, %c0_i32_0 : i32, i32, i32
  }
  func.func @transform_1(%arg0: i32) -> (i32, i32) {
    %c0_i32 = arith.constant 0 : i32
    %c0_i32_0 = arith.constant 0 : i32
    %c0_i32_1 = arith.constant 0 : i32
    return %c0_i32, %c0_i32_0 : i32, i32
  }
  func.func @transform_2(%arg0: i32) -> (i32, i32, i32) {
    %c0_i32 = arith.constant 0 : i32
    %c0_i32_0 = arith.constant 0 : i32
    %c0_i32_1 = arith.constant 0 : i32
    return %arg0, %c0_i32, %c0_i32_0 : i32, i32, i32
  }
  func.func @transform_3(%arg0: i32) -> (i32, i32, i32) {
    %c0_i32 = arith.constant 0 : i32
    %c0_i32_0 = arith.constant 0 : i32
    %c0_i32_1 = arith.constant 0 : i32
    return %arg0, %c0_i32, %c0_i32_0 : i32, i32, i32
  }
  func.func @transform_4(%arg0: i32) -> (i32, i32, i32) {
    %c0_i32 = arith.constant 0 : i32
    %c0_i32_0 = arith.constant 0 : i32
    %c0_i32_1 = arith.constant 0 : i32
    return %arg0, %c0_i32, %c0_i32_0 : i32, i32, i32
  }
  func.func @transform_5(%arg0: i32) -> (i32, i32, i32) {
    %c0_i32 = arith.constant 0 : i32
    %c0_i32_0 = arith.constant 0 : i32
    %c0_i32_1 = arith.constant 0 : i32
    return %arg0, %c0_i32, %c0_i32_0 : i32, i32, i32
  }
  func.func @transform_6(%arg0: i32) -> (i32, i32, i32) {
    %c0_i32 = arith.constant 0 : i32
    %c0_i32_0 = arith.constant 0 : i32
    %c0_i32_1 = arith.constant 0 : i32
    return %arg0, %c0_i32, %c0_i32_0 : i32, i32, i32
  }
  func.func @transform_7(%arg0: i32) -> (i32, i32, i32) {
    %c0_i32 = arith.constant 0 : i32
    %c0_i32_0 = arith.constant 0 : i32
    %c0_i32_1 = arith.constant 0 : i32
    return %arg0, %c0_i32, %c0_i32_0 : i32, i32, i32
  }
  func.func @transform_8(%arg0: i32) -> (i32, i32, i32) {
    %c0_i32 = arith.constant 0 : i32
    %c0_i32_0 = arith.constant 0 : i32
    %c0_i32_1 = arith.constant 0 : i32
    return %arg0, %c0_i32, %c0_i32_0 : i32, i32, i32
  }
  func.func @transform_9(%arg0: i32) -> (i32, i32, i32) {
    %c0_i32 = arith.constant 0 : i32
    %c0_i32_0 = arith.constant 0 : i32
    %c0_i32_1 = arith.constant 0 : i32
    return %arg0, %c0_i32, %c0_i32_0 : i32, i32, i32
  }
  func.func @transform_10(%arg0: i32) -> (i32, i32, i32) {
    %c0_i32 = arith.constant 0 : i32
    %c0_i32_0 = arith.constant 0 : i32
    %c0_i32_1 = arith.constant 0 : i32
    return %arg0, %c0_i32, %c0_i32_0 : i32, i32, i32
  }
  func.func @transform_11(%arg0: i32) -> (i32, i32, i32) {
    %c0_i32 = arith.constant 0 : i32
    %c0_i32_0 = arith.constant 0 : i32
    %c0_i32_1 = arith.constant 0 : i32
    return %arg0, %c0_i32, %c0_i32_0 : i32, i32, i32
  }
  func.func @transform_12(%arg0: i32) -> (i32, i32, i32) {
    %c0_i32 = arith.constant 0 : i32
    %c0_i32_0 = arith.constant 0 : i32
    %c0_i32_1 = arith.constant 0 : i32
    return %arg0, %c0_i32, %c0_i32_0 : i32, i32, i32
  }
  func.func @transform_13(%arg0: i32) -> (i32, i32, i32) {
    %c0_i32 = arith.constant 0 : i32
    %c0_i32_0 = arith.constant 0 : i32
    %c0_i32_1 = arith.constant 0 : i32
    return %arg0, %c0_i32, %c0_i32_0 : i32, i32, i32
  }
  func.func @transform_14(%arg0: i32) -> (i32, i32, i32) {
    %c0_i32 = arith.constant 0 : i32
    %c0_i32_0 = arith.constant 0 : i32
    %c0_i32_1 = arith.constant 0 : i32
    return %arg0, %c0_i32, %c0_i32_0 : i32, i32, i32
  }
  func.func @transform_15(%arg0: i32) -> (i32, i32, i32) {
    %c0_i32 = arith.constant 0 : i32
    %c0_i32_0 = arith.constant 0 : i32
    %c0_i32_1 = arith.constant 0 : i32
    return %arg0, %c0_i32, %c0_i32_0 : i32, i32, i32
  }
  func.func @transform_16(%arg0: i32) -> (i32, i32, i32) {
    %c0_i32 = arith.constant 0 : i32
    %c0_i32_0 = arith.constant 0 : i32
    %c0_i32_1 = arith.constant 0 : i32
    return %arg0, %c0_i32, %c0_i32_0 : i32, i32, i32
  }
}

</mosaic_0001>

<bundles_post_ra>
// kernel: tpu_custom_call.1
= control target key start
LH: loop header
LB: loop body
LE: loop exit
PB: predicated region body
PF: predicated region fallthrough
CT: control target
= control target key end

     0   :  { %s3715_s0 = inlined_call_operand.hbm [shape: f32[2,16,32], index: 0, kind: input, shape index: {}]   ;;  %s3716_s1 = inlined_call_operand.hbm [shape: f32[16,16], index: 1, kind: input, shape index: {}]   ;;  %s3717_s2 = inlined_call_operand.vmem [shape: f32[2,32,96], index: 2, kind: input, shape index: {}]   ;;  %s3718_s3 = inlined_call_operand.vmem [shape: f32[2,1,96], index: 3, kind: input, shape index: {}]   ;;  %s3719_s4 = inlined_call_operand.vmem [shape: f32[2,32,32], index: 4, kind: input, shape index: {}]   ;;  %s3720_s5 = inlined_call_operand.vmem [shape: f32[2,1,32], index: 5, kind: input, shape index: {}]   ;;  %s3721_s6 = inlined_call_operand.vmem [shape: f32[2,1,32], index: 6, kind: input, shape index: {}]   ;;  %s3722_s7 = inlined_call_operand.vmem [shape: f32[2,1,32], index: 7, kind: input, shape index: {}]   ;;  %s3723_s8 = inlined_call_operand.vmem [shape: f32[2,32,64], index: 8, kind: input, shape index: {}]   ;;  %s3724_s9 = inlined_call_operand.vmem [shape: f32[2,1,64], index: 9, kind: input, shape index: {}]   ;;  %s3725_s10 = inlined_call_operand.vmem [shape: f32[2,64,32], index: 10, kind: input, shape index: {}]   ;;  %s3726_s11 = inlined_call_operand.vmem [shape: f32[2,1,32], index: 11, kind: input, shape index: {}]   ;;  %s3727_s12 = inlined_call_operand.vmem [shape: f32[2,1,32], index: 12, kind: input, shape index: {}]   ;;  %s3728_s13 = inlined_call_operand.vmem [shape: f32[2,1,32], index: 13, kind: input, shape index: {}]   ;;  %s3729_s14 = inlined_call_operand.hbm [shape: f32[2,32,128], index: 14, kind: input, shape index: {}]   ;;  %s3730_s15 = inlined_call_operand.vmem [shape: f32[2,1,128], index: 15, kind: input, shape index: {}]   ;;  %s3731_s16 = inlined_call_operand.hbm [shape: f32[2,16,128], index: 16, kind: output, shape index: {}]  }
   0x1   :  { %3751 = sst [smem:[#allocation20_spill]] %s3715_s0 }
   0x2   :  { %3752 = sst [smem:[#allocation21_spill]] %s3728_s13 }
   0x3   :  { %3753 = sst [smem:[#allocation22_spill]] %s3729_s14 }
   0x4   :  { %3754 = sst [smem:[#allocation23_spill]] %s3730_s15 }
   0x5   :  { %3755 = sst [smem:[#allocation24_spill]] %s3731_s16 }
   0x6   :  { %21 = vsyncpa [#allocation3], 0 }
   0x7   :  { %23 = vsyncpa [#allocation3 + $0x1], 0 }
   0x8   :  { %24 = vsyncpa [#allocation6], 0 }
   0x9   :  { %25 = vsyncpa [#allocation4], 0 }
   0xa   :  { %27 = vsyncpa [#allocation4 + $0x1], 0  ;;  %s3239_s21 = smov 0   ;;  %s3241_s22 = smov 0  }
   0xb   :  { %s3243_s23 = smov 0   ;;  %s3245_s24 = smov 0  }
   0xc LB: > { %3756 = sst [smem:[#allocation13_spill]] %s3129_s21  ;;  %s3260_s25 = sadd.s32 1, %s3141_s24   ;;  %s3141_s24 = sphi %s3245_s24, %s3790_s24   ;;  %s3137_s23 = sphi %s3243_s23, %s3792_s23   ;;  %s3133_s22 = sphi %s3241_s22, %s3794_s22   ;;  %s3129_s21 = sphi %s3239_s21, %s3793_s21  }
   0xd   : > { %3757 = sst [smem:[#allocation14_spill]] %s3137_s23  ;;  %s40_s26 = sadd.s32 1, %s3137_s23 }
   0xe   : > { %3758 = sst [smem:[#allocation15_spill]] %s3141_s24  ;;  %s37_s27 = ssub.s32 %s3141_s24, %s3260_s25 }
   0xf   : > { %3759 = sst [smem:[#allocation16_spill]] %s3260_s25  ;;  %p47_p0 = scmp.ne.s32.totalorder %s3137_s23, %s3133_s22 }
  0x10   : > { %p38_p1 = scmp.eq.s32.totalorder %s37_s27, 0  ;;  %p48_p2 = scmp.eq.s32.totalorder %s3141_s24, 0 }
  0x11   : > { %p2867_p5 = scmp.lt.s32.totalorder %s3141_s24, 2  ;;  %s501_s29 = sand.u32 1, %s3141_s24  }
  0x12   : > { %s3269_s28 = scalar_select %p38_p1, %s3137_s23, %s40_s26  }
  0x13   : > { %p49_p3 = por %p48_p2, %p47_p0  ;;  %s503_s30 = sand.u32 1, %s3137_s23  }
  0x14   : > { %3760 = sst [smem:[#allocation17_spill]] %s3269_s28  ;;  %s2484_s0 = sshll.u32 %s503_s30, 4 }
  0x15   : > { %s2555_s17 = sshll.u32 %s3141_s24, 8  ;;  %s3761_s20 = sld [smem:[#allocation20_spill]] }
  0x16   : > { %s505_s27 = scalar_lea.vmem [#allocation2], %s2484_s0  ;;  %p3284_p6 = pnand %p2867_p5, %p49_p3 }
  0x17   : > { %s512_s26 = sshll.u32 %s505_s27, 4  ;;  %s3290_s25 = sshll.u32 %s503_s30, 5  ;;  %s3288_s26 = int_to_ptr.vmem [resolvable:$true] %s512_s26 }
  0x18   : > { %s3292_s15 = scalar_lea.sflag [#allocation3], %s501_s29  ;;  %p2981_p8 = pneg %p3284_p6 }
  0x1b   : > { %s3282_s16 = scalar_lea.hbm %s3761_s20, %s2555_s17  ;;  %s2984_s19 = scalar_lea.hbm %s3761_s20, 512 }
  0x1c   : > { %s2979_s17 = scalar_lea.hbm %s3282_s16, 256  ;;  %p2985_p11 = scmp.lt.u32.totalorder %s3282_s16, %s3761_s20 }
  0x1d   : > { %p2980_p7 = scmp.ne.s32.totalorder %s3282_s16, %s2979_s17  ;;  %p2986_p12 = scmp.lt.u32.totalorder %s2984_s19, %s2979_s17 }
  0x1e   : > { %p2988_p1 = scmp.lt.u32.totalorder %s2979_s17, %s3282_s16 }
  0x1f   : > { %p2982_p9 = pnand %p2981_p8, %p2980_p7  ;;  %p2987_p13 = por %p2986_p12, %p2985_p11 }
  0x21   : > { %p2983_p10 = pneg %p2982_p9  ;;  %p2989_p2 = por %p2988_p1, %p2987_p13 }
  0x23   : > { %p2990_p3 = pnand %p2989_p2, %p2983_p10 }
  0x25   : > { %2993 = shalt.err (!%p2990_p3)
}
  0x26   : > { %s2994_s29 = scalar_lea.vmem %s3288_s26, 256  ;;  %s3143_s30 = smov [#allocation2]  }
  0x27   : > { %p2995_p5 = scmp.ne.s32.totalorder %s3288_s26, %s2994_s29  ;;  %s2999_s0 = sshll.u32 %s3143_s30, 4  ;;  %s3000_s0 = int_to_ptr.vmem [resolvable:$false] %s2999_s0 }
  0x28   : > { %s3001_s13 = scalar_lea.vmem %s3000_s0, 512  ;;  %p3002_p4 = scmp.lt.s32.totalorder %s3288_s26, %s3000_s0 }
  0x29   : > { %p2997_p7 = pnand %p2995_p5, %p2981_p8  ;;  %p3003_p11 = scmp.lt.s32.totalorder %s3001_s13, %s2994_s29 }
  0x2b   : > { %p2998_p9 = pneg %p2997_p7  ;;  %p3004_p12 = por %p3003_p11, %p3002_p4 }
  0x2d   : > { %p3005_p13 = pnand %p3004_p12, %p2998_p9 }
  0x2f   : > { %3008 = shalt.err (!%p3005_p13)
}
  0x30   : > { %s3736_s17 = smov 128   ;;  %s3738_s18 = smov 8  }
  0x31   : > { %2858 = dma.hbm_to_vmem [thread:$0]  (!%p3284_p6), %s3282_s16, 256, %s3288_s26, %s3292_s15, %s3736_s17, %s3736_s17, %s3738_s18  }
  0x32   : > { %s3324_s19 = sadd.s32 4294967295, %s3141_s24   ;;  %s2480_s27 = sadd.s32 4294967294, %s3141_s24  }
  0x33   : > { %p53_p4 = scmp.ne.s32.totalorder %s3133_s22, %s3129_s21  ;;  %p3744_p10 = scmp.eq.s32.totalorder %s3324_s19, 0 }
  0x34   : > { %p462_p1 = scmp.eq.s32.totalorder %s3324_s19, 1  ;;  %p468_p2 = scmp.eq.s32.totalorder %s2480_s27, 1 }
  0x35   : > { %p2481_p3 = scmp.ge.s32.totalorder %s3141_s24, 1  ;;  %p3334_p5 = por %p3744_p10, %p53_p4 }
  0x36   : > { %p3341_p7 = por %p462_p1, %p47_p0  ;;  %p3345_p9 = por %p468_p2, %p53_p4 }
  0x37   : > { %s3763_s29 = scalar_select %p3334_p5, 1, 0 }
  0x38   : > { %s3764_s16 = scalar_select %p3341_p7, 1, 0 }
  0x39   : > { %s3766_s26 = scalar_select %p3345_p9, 1, 0 }
  0x3a   : > { %3765 = sst [smem:[#allocation18_spill]] %s3764_s16  ;;  %p475_p11 = scmp.lt.s32.totalorder %s3141_s24, 3 }
  0x3b   : > { %3767 = sst [smem:[#allocation19_spill]] %s3766_s26  ;;  %s606_s30 = scalar_lea.vmem [#allocation7], %s3290_s25 }
  0x3c   : > { %s613_s0 = sshll.u32 %s606_s30, 4  ;;  %p3351_p12 = pnand %p2481_p3, %p475_p11  ;;  %s3363_s0 = int_to_ptr.vmem [resolvable:$true] %s613_s0 }
  0x3d   : > { %s3146_s27 = smov [#allocation5]   ;;  %s2556_s18 = sshll.u32 %s3141_s24, 9 }
  0x3e   : > { %s3768_s13 = scalar_select %p3351_p12, 1, 0 }
  0x3f   : > { %s487_s17 = sshll.u32 %s3146_s27, 4  ;;  %p2851_p0 = pneg %p3351_p12  ;;  %s3365_s17 = int_to_ptr.vmem [resolvable:$true] %s487_s17 }
  0x40   : > { %s3769_s14 = sld [smem:[#allocation22_spill]] }
  0x41   : > { %p3369_p13 = pnand %p2851_p0, %p3744_p10 }
  0x46   : > { %s3361_s21 = scalar_lea.hbm %s3769_s14, %s2556_s18  ;;  %s3014_s18 = scalar_lea.hbm %s3769_s14, 1024 }
  0x47   : > { %s3009_s30 = scalar_lea.hbm %s3361_s21, 512  ;;  %p3015_p3 = scmp.lt.u32.totalorder %s3361_s21, %s3769_s14 }
  0x48   : > { %p3010_p4 = scmp.ne.s32.totalorder %s3361_s21, %s3009_s30  ;;  %p3016_p11 = scmp.lt.u32.totalorder %s3014_s18, %s3009_s30 }
  0x49   : > { %p3018_p0 = scmp.lt.u32.totalorder %s3009_s30, %s3361_s21 }
  0x4a   : > { %p3012_p1 = pnand %p3010_p4, %p2981_p8  ;;  %p3017_p9 = por %p3016_p11, %p3015_p3 }
  0x4c   : > { %p3013_p2 = pneg %p3012_p1  ;;  %p3019_p10 = por %p3018_p0, %p3017_p9 }
  0x4e   : > { %p3020_p7 = pnand %p3019_p10, %p3013_p2 }
  0x50   : > { %3023 = shalt.err (!%p3020_p7)
}
  0x51   : > { %s3024_s26 = scalar_lea.vmem %s3363_s0, 512  ;;  %s3147_s23 = smov [#allocation7]  }
  0x52   : > { %p3025_p4 = scmp.ne.s32.totalorder %s3363_s0, %s3024_s26  ;;  %s3029_s20 = sshll.u32 %s3147_s23, 4  ;;  %s3030_s20 = int_to_ptr.vmem [resolvable:$false] %s3029_s20 }
  0x53   : > { %s3031_s24 = scalar_lea.vmem %s3030_s20, 1024  ;;  %p3032_p12 = scmp.lt.s32.totalorder %s3363_s0, %s3030_s20 }
  0x54   : > { %p3027_p1 = pnand %p3025_p4, %p2981_p8  ;;  %p3033_p3 = scmp.lt.s32.totalorder %s3031_s24, %s3024_s26 }
  0x56   : > { %p3028_p5 = pneg %p3027_p1  ;;  %p3034_p11 = por %p3033_p3, %p3032_p12 }
  0x58   : > { %p3035_p9 = pnand %p3034_p11, %p3028_p5 }
  0x5a   : > { %3038 = shalt.err (!%p3035_p9)
}
  0x5b   : > { %s3771_s30 = smov 8   ;;  %s3772_s18 = smov 128  }
  0x5c   : > { %2861 = dma.hbm_to_vmem [thread:$0]  (!%p3284_p6), %s3361_s21, 512, %s3363_s0, %s3292_s15, %s3772_s18, %s3772_s18, %s3771_s30  }
  0x5d   : > { %s3039_s23 = scalar_lea.hbm %s3716_s1, 256  ;;  %p3041_p10 = pneg %p3369_p13 }
  0x5e   : > { %p3040_p8 = scmp.ne.s32.totalorder %s3716_s1, %s3039_s23  ;;  %p3046_p12 = scmp.lt.u32.totalorder %s3039_s23, %s3716_s1 }
  0x60   : > { %p3042_p5 = pnand %p3041_p10, %p3040_p8 }
  0x62   : > { %p3043_p7 = pneg %p3042_p5 }
  0x64   : > { %p3048_p2 = pnand %p3046_p12, %p3043_p7 }
  0x66   : > { %3051 = shalt.err (!%p3048_p2)
}
  0x67   : > { %s3052_s15 = scalar_lea.vmem %s3365_s17, 256  ;;  %p3060_p1 = scmp.lt.s32.totalorder %s3365_s17, %s3365_s17 }
  0x68   : > { %p3053_p6 = scmp.ne.s32.totalorder %s3365_s17, %s3052_s15  ;;  %p3061_p3 = scmp.lt.s32.totalorder %s3052_s15, %s3052_s15 }
  0x6a   : > { %p3055_p0 = pnand %p3053_p6, %p3041_p10  ;;  %p3062_p11 = por %p3061_p3, %p3060_p1 }
  0x6c   : > { %p3056_p4 = pneg %p3055_p0 }
  0x6e   : > { %p3063_p9 = pnand %p3062_p11, %p3056_p4 }
  0x70   : > { %3066 = shalt.err (!%p3063_p9)
}
  0x71   : > { %2854 = dma.hbm_to_vmem [thread:$0]  (!%p3369_p13), %s3716_s1, 256, %s3365_s17, [#allocation6], %s3772_s18, %s3772_s18, %s3771_s30  }
  0x72   : > { %p3773_p8 = scmp.ne.s32.totalorder %s3768_s13, 0 }
  0x73   : > { %s633_s16 = sand.u32 (!%p3773_p8), 1, %s3324_s19   ;;  %s3428_s0 = sand.u32 (!%p3773_p8), 1, %s3133_s22  }
  0x74   : > { %631 = sbr.rel (%p3773_p8) target bundleno = 3385 (0xd39), region = 84  ;;  %s2491_s25 = sshll.u32 (!%p3773_p8), %s3428_s0, 4 }
  0x75   : > { %s634_s24 = scalar_lea.sflag (!%p3773_p8), [#allocation3], %s633_s16  ;;  %s637_s27 = scalar_lea.vmem (!%p3773_p8), [#allocation2], %s2491_s25 }
  0x76   : > { %p3774_p10 = scmp.ne.s32.totalorder (!%p3773_p8), %s3763_s29, 0 }
  0x7b   : > { %3112 = dma.done.wait (%p3774_p10), %s634_s24, 256  }
  0x7c   : > { %3114 = vsyncadd (%p3774_p10), %s634_s24, 4294967040  ;;  %p3775_p13 = scmp.eq.s32.totalorder %s3324_s19, 0 }
  0x7e   : > { %3116 = dma.done.wait (%p3775_p13), [#allocation6], 256   ;;  %p3776_p5 = pmov %p3775_p13 }
  0x7f   : > { %s2493_s17 = sshll.u32 %s3428_s0, 5 }
  0x80   : > { %3118 = vsyncadd (%p3776_p5), [#allocation6], 4294967040  ;;  %s3442_s13 = scalar_lea.vmem [#allocation7], %s2493_s17 }
  0x81   : > { %3120 = dma.done.wait (%p3774_p10), %s634_s24, 512  }
  0x82   : > { %3122 = vsyncadd (%p3774_p10), %s634_s24, 4294966784  ;;  %p751_p7 = scmp.lt.s32.totalorder %s3324_s19, 1  ;;  %vm813_vm0 = vcmask 261120   ;;  %v3459_v5 = vld [vmem:[%s637_s27] sm:$0xff]  ;;  %v3463_v7 = vld [vmem:[%s637_s27 + $0x8] sm:$0xff]  ;;  %v895_v8 = vlaneseq  ;;  %v3148_v10 = vmov 0.0  }
  0x83   : > { %2636 = vmatprep.mubr.msk.f32.mxu0 %vm813_vm0, %v3459_v5  ;;  %s3149_s14 = smov 96   ;;  %vm3487_vm11 = vmpackc.low %vm813_vm0, %vm813_vm0  ;;  %v3521_v34 = vld [vmem:[#allocation5 + $0x8] sm:$0xff]  ;;  %v3523_v35 = vld [vmem:[#allocation5] sm:$0xff]  ;;  %vm999_vm12 = vcmask 130048   ;;  %s3150_s21 = smov 64   ;;  %vm2012_vm13 = vcmask 523264  }
  0x84   : > { %s3450_s30 = scalar_select %p751_p7, %s3324_s19, 1  ;;  %v896_v9 = vand.u32 127, %v895_v8 }
  0x85   : > { %s3779_s17 = sld [smem:[#allocation21_spill]]  ;;  %s3780_s29 = sld [smem:[#allocation23_spill]] }
  0x86   : > { %s3453_s18 = sshll.u32 %s3450_s30, 5  ;;  %vm1326_vm1 = vcmp.ge.s32.totalorder %v896_v9, 16  ;;  %vm1327_vm2 = vcmp.lt.s32.totalorder %v896_v9, 24  ;;  %vm1537_vm4 = vcmp.ge.s32.totalorder %v896_v9, 24  ;;  %vm1538_vm5 = vcmp.lt.s32.totalorder %v896_v9, 32  ;;  %s758_s15 = scalar_lea.vmem %s3718_s3, %s3450_s30 }
  0x87   : > { %s755_s28 = scalar_lea.vmem %s3717_s2, %s3453_s18  ;;  %vm1328_vm3 = vmand %vm1326_vm1, %vm1327_vm2  ;;  %vm1028_vm7 = vcmp.ge.s32.totalorder %v896_v9, 8  ;;  %vm1029_vm8 = vcmp.lt.s32.totalorder %v896_v9, 16  ;;  %v2503_v13 = vld [vmem:[%s758_s15] ss:$0 sm:$0xff]  ;;  %vm898_vm9 = vcmp.lt.s32.totalorder %v896_v9, 8  ;;  %s763_s27 = scalar_lea.vmem %s3719_s4, %s3453_s18 }
  0x88   : > { %v802_v0 = vld [vmem:[%s755_s28] sm:$0xff]  ;;  %v803_v1 = vld [vmem:[%s755_s28 + $0x8] sm:$0xff]  ;;  %v804_v2 = vld [vmem:[%s755_s28 + $0x10] sm:$0xff]  ;;  %v3467_v11 = vsel %vm1328_vm3, 1.0, %v3148_v10  ;;  %v2506_v17 = vsel %vm898_vm9, 1.0, %v3148_v10  ;;  %s766_s20 = scalar_lea.vmem %s3720_s5, %s3450_s30  ;;  %s777_s26 = scalar_lea.vmem %s3723_s8, %s3453_s18 }
  0x89   : > { %v2747_v3 = vpack.c.bf16 %v803_v1, %v802_v0  ;;  %v805_v4 = vld [vmem:[%s755_s28 + $0x18] sm:$0xff]  ;;  %vm1539_vm6 = vmand %vm1537_vm4, %vm1538_vm5  ;;  %s772_s24 = scalar_lea.vmem %s3722_s7, %s3450_s30  ;;  %s3781_s18 = sld [smem:[#allocation18_spill]] }
  0x8a   : > { %v2751_v6 = vpack.c.bf16 %v805_v4, %v804_v2  ;;  %v3469_v12 = vsel %vm1539_vm6, 1.0, %v3148_v10  ;;  %vm1030_vm10 = vmand %vm1028_vm7, %vm1029_vm8  ;;  %s750_s15 = scalar_lea.vmem [#allocation8], %s2491_s25  ;;  %s2235_s25 = scalar_lea.sflag [#allocation4], %s3428_s0 }
  0x8b   : > { %2748 = vmatprep.subr.bf16.mxu0 %v2747_v3  ;;  %v2511_v18 = vsel %vm1030_vm10, 1.0, %v3148_v10  ;;  %s794_s23 = scalar_lea.vmem %s3779_s17, %s3450_s30 }
  0x8c   : > { %2750 = vmatpush3.bf16.msra.mxu0 %v2747_v3 }
  0x8d   : > { %2752 = vmatprep.subr.bf16.mxu0 %v2751_v6 }
  0x8f   : > { %p3784_p2 = scmp.ne.s32.totalorder %s3781_s18, 0 }
  0x90   : > { %2754 = vmatpush3.bf16.msra.mxu0 %v2751_v6 }
  0x93   : > { %2637 = vmatmul.mubr.msk.f32.vlgmr.msra.gmra.mrb[0].mxu0 %vm813_vm0, %v3463_v7 }
 0x166   : > { %v2638_v14 = vpop.f32.mrb[0].mxu0 }
 0x167   : > { %v3475_v15 = vadd.f32 %v2638_v14, %v2503_v13  ;;  %v886_v16 = vpop.f32.mrb[1].mxu0 }
 0x168   : > { %v3477_v19 = vadd.f32 %v2503_v13, %v886_v16 }
 0x169   : > { %v903_v28 = vmul.f32 %v2506_v17, %v3475_v15  ;;  %v1034_v29 = vmul.f32 %v2511_v18, %v3475_v15  ;;  %v1332_v31 = vmul.f32 %v3467_v11, %v3475_v15 }
 0x16a   : > { %v2910_v20 = vpack.i.bf16 %v3475_v15, %v3477_v19  ;;  %v902_v21 = vmul.f32 %v2506_v17, %v3477_v19  ;;  %v1033_v22 = vmul.f32 %v2511_v18, %v3477_v19  ;;  %v1331_v30 = vmul.f32 %v3467_v11, %v3477_v19 }
 0x16c   : > { %2911 = vrot.lane.b32.xlu0 %v2910_v20, %s3149_s14  ;;  %2643 = vmatprep.mubr.msk.f32.mxu1 %vm813_vm0, %v902_v21  ;;  %s769_s14 = scalar_lea.vmem %s3721_s6, %s3450_s30 }
 0x16d   : > { %2650 = vmatprep.mubr.msk.f32.mxu0 %vm813_vm0, %v1033_v22 }
 0x1de   : > { %v2912_v23 = vpop.permute.xlu0 %2911 }
 0x1df   : > { %v2914_v24 = vunpack.i.h.bf16 %v2912_v23  ;;  %v2913_v25 = vunpack.i.l.bf16 %v2912_v23 }
 0x1e1   : > { %v3491_v27 = vpack.c.bf16 %v2914_v24, %v2913_v25 }
 0x1e3   : > { %2757 = vmatprep.subr.msk.bf16.mxu1 %vm3487_vm11, %v3491_v27  ;;  %2763 = vmatprep.subr.msk.bf16.mxu0 %vm3487_vm11, %v3491_v27 }
 0x1e4   : > { %2760 = vmatpush3.bf16.xpose.msk.msra.mxu1 %vm3487_vm11, %v3491_v27  ;;  %2766 = vmatpush3.bf16.xpose.msk.msra.mxu0 %vm3487_vm11, %v3491_v27 }
 0x1e5   : > { %2777 = vmatprep.subr.msk.bf16.mxu0 %vm3487_vm11, %v3491_v27 }
 0x1eb   : > { %2644 = vmatmul.mubr.msk.f32.vlgmr.msra.gmra.mrb[0].mxu1 %vm813_vm0, %v903_v28  ;;  %2651 = vmatmul.mubr.msk.f32.vlgmr.msra.gmra.mrb[2].mxu0 %vm813_vm0, %v1034_v29 }
 0x1ec   : > { %2780 = vmatpush3.bf16.xpose.msk.msra.mxu0 %vm3487_vm11, %v3491_v27  ;;  %2671 = vmatprep.mubr.msk.f32.mxu0 %vm813_vm0, %v1331_v30 }
 0x1f3   : > { %2672 = vmatmul.mubr.msk.f32.vlgmr.msra.gmra.mrb[4].mxu0 %vm813_vm0, %v1332_v31 }
 0x2be   : > { %v2645_v32 = vpop.f32.mrb[0].mxu1  ;;  %v2652_v33 = vpop.f32.mrb[2].mxu0 }
 0x2bf   : > { %v996_v36 = vmul.f32 0.35355338, %v2645_v32  ;;  %v1117_v37 = vmul.f32 0.35355338, %v2652_v33  ;;  %v986_v38 = vpop.f32.mrb[1].mxu1  ;;  %v1107_v39 = vpop.f32.mrb[3].mxu0 }
 0x2c0   : > { %v1116_v40 = vmul.f32 0.35355338, %v1107_v39  ;;  %v995_v49 = vmul.f32 0.35355338, %v986_v38 }
 0x2c1   : > { %v1119_v41 = vadd.f32 %v1117_v37, %v3521_v34  ;;  %v998_v44 = vadd.f32 %v996_v36, %v3521_v34 }
 0x2c2   : > { %v1118_v42 = vadd.f32 %v1116_v40, %v3523_v35  ;;  %v997_v51 = vadd.f32 %v995_v49, %v3523_v35 }
 0x2c3   : > { %v1123_v43 = vsel %vm999_vm12, %v1119_v41, -inf  ;;  %v1003_v48 = vsel %vm999_vm12, %v998_v44, -inf }
 0x2c4   : > { %1124 = vmax.xlane.f32.xlu1 %v1123_v43  ;;  %v1120_v45 = vsel %vm999_vm12, %v1118_v42, -inf  ;;  %v1000_v53 = vsel %vm999_vm12, %v997_v51, -inf }
 0x2c5   : > { %1121 = vmax.xlane.f32.xlu0 %v1120_v45 }
 0x2c6   : > { %v2673_v46 = vpop.f32.mrb[4].mxu0 }
 0x2c7   : > { %v1405_v47 = vpop.f32.mrb[5].mxu0  ;;  %v1415_v50 = vmul.f32 0.35355338, %v2673_v46 }
 0x2c8   : > { %1004 = vmax.xlane.f32.xlu1 %v1003_v48  ;;  %v1414_v52 = vmul.f32 0.35355338, %v1405_v47 }
 0x2c9   : > { %v1417_v54 = vadd.f32 %v1415_v50, %v3521_v34 }
 0x2ca   : > { %v1416_v56 = vadd.f32 %v1414_v52, %v3523_v35 }
 0x2cb   : > { %v1421_v55 = vsel %vm999_vm12, %v1417_v54, -inf }
 0x2cc   : > { %v1418_v57 = vsel %vm999_vm12, %v1416_v56, -inf }
 0x2d9   : > { %1143 = vrot.lane.b32.xlu1 %v2511_v18, %s3150_s21 }
 0x2db   : > { %1023 = vrot.lane.b32.xlu0 %v2506_v17, %s3150_s21 }
 0x2fd   : > { %1001 = vmax.xlane.f32.xlu1 %v1000_v53 }
 0x301   : > { %1422 = vmax.xlane.f32.xlu1 %v1421_v55 }
 0x305   : > { %1419 = vmax.xlane.f32.xlu1 %v1418_v57 }
 0x316   : > { %1441 = vrot.lane.b32.xlu1 %v3467_v11, %s3150_s21 }
 0x351   : > { %v1125_v58 = vpop.xlane.xlu1 %1124 }
 0x352   : > { %v1127_v59 = vsub.f32 %v1119_v41, %v1125_v58  ;;  %v1122_v6 = vpop.xlane.xlu0 %1121 }
 0x353   : > { %v1126_v8 = vsub.f32 %v1118_v42, %v1122_v6 }
 0x354   : > { %v1130_v60 = vmul.f32 1.442695, %v1127_v59 }
 0x355   : > { %v1005_v61 = vpop.xlane.xlu1 %1004  ;;  %v1128_v10 = vmul.f32 1.442695, %v1126_v8 }
 0x356   : > { %2935 = vpow2.f32 %v1130_v60  ;;  %v1007_v4 = vsub.f32 %v998_v44, %v1005_v61  ;;  %v1024_v38 = vpop.permute.xlu0 %1023 }
 0x357   : > { %v1026_v41 = vmul.f32 %v1024_v38, %v3477_v19  ;;  %v1027_v42 = vmul.f32 %v1024_v38, %v3475_v15 }
 0x358   : > { %v1010_v9 = vmul.f32 1.442695, %v1007_v4 }
 0x359   : > { %v1144_v62 = vpop.permute.xlu1 %1143  ;;  %v2920_v44 = vpack.i.bf16 %v1027_v42, %v1026_v41  ;;  %v1750_v41 = vld [vmem:[%s763_s27 + $0x10] sm:$0xff] }
 0x35a   : > { %v1146_v63 = vmul.f32 %v1144_v62, %v3477_v19  ;;  %v1147_v0 = vmul.f32 %v1144_v62, %v3475_v15  ;;  %2937 = vpow2.f32 %v1010_v9 }
 0x35b   : > { %2939 = vpow2.f32 %v1128_v10 }
 0x35c   : > { %v2915_v1 = vpack.i.bf16 %v1147_v0, %v1146_v63 }
 0x35e   : > { %2916 = vrot.lane.b32.xlu1 %v2915_v1, %s3150_s21 }
 0x360   : > { %v2936_v2 = vpop.eup %2935 }
 0x361   : > { %v1135_v3 = vsel %vm999_vm12, %v2936_v2, 0.0 }
 0x362   : > { %1136 = vadd.xlane.f32.xlu0 %v1135_v3 }
 0x364   : > { %v3545_v11 = vpop.eup %2937 }
 0x365   : > { %v1015_v13 = vsel %vm999_vm12, %v3545_v11, 0.0  ;;  %v2940_v14 = vpop.eup %2939 }
 0x366   : > { %v1132_v16 = vsel %vm999_vm12, %v2940_v14, 0.0 }
 0x382   : > { %1016 = vadd.xlane.f32.xlu1 %v1015_v13 }
 0x386   : > { %1133 = vadd.xlane.f32.xlu1 %v1132_v16  ;;  %v1542_v16 = vmul.f32 %v3469_v12, %v3477_v19 }
 0x38a   : > { %v1002_v17 = vpop.xlane.xlu1 %1001 }
 0x38b   : > { %v1006_v18 = vsub.f32 %v997_v51, %v1002_v17 }
 0x38d   : > { %v1008_v20 = vmul.f32 1.442695, %v1006_v18 }
 0x38e   : > { %v1423_v21 = vpop.xlane.xlu1 %1422 }
 0x38f   : > { %2941 = vpow2.f32 %v1008_v20  ;;  %v1425_v22 = vsub.f32 %v1417_v54, %v1423_v21 }
 0x391   : > { %v1428_v23 = vmul.f32 1.442695, %v1425_v22 }
 0x392   : > { %v1420_v24 = vpop.xlane.xlu1 %1419 }
 0x393   : > { %2943 = vpow2.f32 %v1428_v23  ;;  %v1424_v25 = vsub.f32 %v1416_v56, %v1420_v24 }
 0x395   : > { %v1426_v28 = vmul.f32 1.442695, %v1424_v25 }
 0x396   : > { %v1442_v37 = vpop.permute.xlu1 %1441 }
 0x397   : > { %2945 = vpow2.f32 %v1426_v28  ;;  %v1444_v39 = vmul.f32 %v1442_v37, %v3477_v19  ;;  %v1445_v40 = vmul.f32 %v1442_v37, %v3475_v15 }
 0x399   : > { %v2942_v29 = vpop.eup %2941  ;;  %v2925_v43 = vpack.i.bf16 %v1445_v40, %v1444_v39  ;;  %v1748_v39 = vld [vmem:[%s763_s27] sm:$0xff]  ;;  %v1749_v40 = vld [vmem:[%s763_s27 + $0x8] sm:$0xff] }
 0x39a   : > { %v1012_v30 = vsel %vm999_vm12, %v2942_v29, 0.0  ;;  %v2795_v42 = vpack.c.bf16 %v1749_v40, %v1748_v39 }
 0x39b   : > { %1013 = vadd.xlane.f32.xlu1 %v1012_v30 }
 0x39c   : > { %2796 = vmatprep.subr.bf16.mxu0 %v2795_v42 }
 0x39d   : > { %v3551_v31 = vpop.eup %2943  ;;  %2798 = vmatpush3.bf16.msra.mxu0 %v2795_v42 }
 0x39e   : > { %v1433_v32 = vsel %vm999_vm12, %v3551_v31, 0.0 }
 0x39f   : > { %1434 = vadd.xlane.f32.xlu0 %v1433_v32 }
 0x3a1   : > { %v2946_v33 = vpop.eup %2945 }
 0x3a2   : > { %v1430_v36 = vsel %vm999_vm12, %v2946_v33, 0.0 }
 0x3a3   : > { %1431 = vadd.xlane.f32.xlu1 %v1430_v36 }
 0x3b4   : > { %2926 = vrot.lane.b32.xlu1 %v2925_v43, %s3150_s21  ;;  %v1751_v43 = vld [vmem:[%s763_s27 + $0x18] sm:$0xff]  ;;  %s2560_s27 = sshll.u32 %s3450_s30, 6 }
 0x3b5   : > { %2921 = vrot.lane.b32.xlu0 %v2920_v44, %s3150_s21  ;;  %v2799_v44 = vpack.c.bf16 %v1751_v43, %v1750_v41 }
 0x3b7   : > { %2800 = vmatprep.subr.bf16.mxu0 %v2799_v44 }
 0x3b8   : > { %2802 = vmatpush3.bf16.msra.mxu0 %v2799_v44 }
 0x3d0   : > { %v2917_v45 = vpop.permute.xlu1 %2916 }
 0x3d1   : > { %v2919_v46 = vunpack.i.h.bf16 %v2917_v45  ;;  %v2918_v47 = vunpack.i.l.bf16 %v2917_v45 }
 0x3d3   : > { %v2767_v48 = vpack.c.bf16 %v2919_v46, %v2918_v47 }
 0x3d5   : > { %2768 = vmatprep.subr.bf16.mxu1 %v2767_v48 }
 0x3d6   : > { %2770 = vmatpush3.bf16.msra.mxu1 %v2767_v48 }
 0x3ef   : > { %v1137_v50 = vpop.xlane.xlu0 %1136 }
 0x3f0   : > { %2947 = vrcp.f32 %v1137_v50 }
 0x3fa   : > { %v2948_v52 = vpop.eup %2947 }
 0x3fb   : > { %v1141_v55 = vmul.f32 %v2948_v52, %v2936_v2 }
 0x40f   : > { %v1017_v49 = vpop.xlane.xlu1 %1016 }
 0x413   : > { %v1134_v51 = vpop.xlane.xlu1 %1133 }
 0x414   : > { %2949 = vrcp.f32 %v1134_v51 }
 0x41e   : > { %v2950_v53 = vpop.eup %2949 }
 0x41f   : > { %v1140_v54 = vmul.f32 %v2950_v53, %v2940_v14 }
 0x421   : > { %2657 = vmatprep.mubr.msk.f32.mxu1 %vm999_vm12, %v1140_v54 }
 0x422   : > { %2658 = vmatmul.mubr.msk.f32.vlgmr.msra.gmra.mrb[2].mxu1 %vm999_vm12, %v1141_v55  ;;  %v2534_v55 = vld [vmem:[%s766_s20] ss:$0 sm:$0xff]  ;;  %s785_s20 = scalar_lea.vmem %s3725_s10, %s2560_s27 }
 0x423   : > { %v2001_v40 = vld [vmem:[%s785_s20 + $0x20] sm:$0xff]  ;;  %v2002_v41 = vld [vmem:[%s785_s20 + $0x28] sm:$0xff]  ;;  %v2003_v43 = vld [vmem:[%s785_s20 + $0x30] sm:$0xff] }
 0x424   : > { %v2819_v42 = vpack.c.bf16 %v2002_v41, %v2001_v40  ;;  %v2004_v44 = vld [vmem:[%s785_s20 + $0x38] sm:$0xff]  ;;  %v2546_v41 = vld [vmem:[%s794_s23] ss:$0 sm:$0xff] }
 0x428   : > { %v1014_v56 = vpop.xlane.xlu1 %1013 }
 0x429   : > { %2951 = vrcp.f32 %v1014_v56 }
 0x42a   : > { %2953 = vrcp.f32 %v1017_v49 }
 0x42c   : > { %v1435_v57 = vpop.xlane.xlu0 %1434 }
 0x430   : > { %v2922_v58 = vpop.permute.xlu0 %2921  ;;  %v1432_v59 = vpop.xlane.xlu1 %1431 }
 0x431   : > { %v2924_v60 = vunpack.i.h.bf16 %v2922_v58  ;;  %v2923_v61 = vunpack.i.l.bf16 %v2922_v58  ;;  %2955 = vrcp.f32 %v1432_v59 }
 0x432   : > { %2957 = vrcp.f32 %v1435_v57 }
 0x433   : > { %v2952_v62 = vpop.eup %2951  ;;  %v2771_v63 = vpack.c.bf16 %v2924_v60, %v2923_v61 }
 0x434   : > { %v2954_v0 = vpop.eup %2953  ;;  %v2927_v1 = vpop.permute.xlu1 %2926  ;;  %v1020_v3 = vmul.f32 %v2952_v62, %v2942_v29 }
 0x435   : > { %v2929_v2 = vunpack.i.h.bf16 %v2927_v1  ;;  %v2928_v4 = vunpack.i.l.bf16 %v2927_v1  ;;  %2772 = vmatprep.subr.bf16.mxu1 %v2771_v63  ;;  %v1021_v6 = vmul.f32 %v2954_v0, %v3545_v11  ;;  %v1543_v11 = vmul.f32 %v3469_v12, %v3475_v15 }
 0x436   : > { %2774 = vmatpush3.bf16.msra.mxu1 %v2771_v63  ;;  %2664 = vmatprep.mubr.msk.f32.mxu1 %vm999_vm12, %v1020_v3 }
 0x437   : > { %v2781_v8 = vpack.c.bf16 %v2929_v2, %v2928_v4 }
 0x439   : > { %2665 = vmatmul.mubr.msk.f32.vlgmr.msra.gmra.mrb[2].mxu1 %vm999_vm12, %v1021_v6  ;;  %2782 = vmatprep.subr.bf16.mxu1 %v2781_v8 }
 0x43a   : > { %2784 = vmatpush3.bf16.msra.mxu1 %v2781_v8 }
 0x43b   : > { %v2956_v9 = vpop.eup %2955  ;;  %2787 = vmatprep.subr.msk.bf16.mxu1 %vm3487_vm11, %v3491_v27 }
 0x43c   : > { %v2958_v10 = vpop.eup %2957  ;;  %v1438_v13 = vmul.f32 %v2956_v9, %v2946_v33 }
 0x43d   : > { %v1439_v14 = vmul.f32 %v2958_v10, %v3551_v31 }
 0x43e   : > { %2678 = vmatprep.mubr.msk.f32.mxu1 %vm999_vm12, %v1438_v13  ;;  %v1888_v13 = vld [vmem:[%s777_s26 + $0x8] sm:$0xff] }
 0x441   : > { %2679 = vmatmul.mubr.msk.f32.vlgmr.msra.gmra.mrb[2].mxu1 %vm999_vm12, %v1439_v14 }
 0x442   : > { %2685 = vmatprep.mubr.msk.f32.mxu1 %vm813_vm0, %v1542_v16  ;;  %v1889_v16 = vld [vmem:[%s777_s26 + $0x10] sm:$0xff] }
 0x443   : > { %2790 = vmatpush3.bf16.xpose.msk.msra.mxu1 %vm3487_vm11, %v3491_v27 }
 0x44a   : > { %2686 = vmatmul.mubr.msk.f32.vlgmr.msra.gmra.mrb[4].mxu1 %vm813_vm0, %v1543_v11  ;;  %v1890_v11 = vld [vmem:[%s777_s26 + $0x18] sm:$0xff] }
 0x51d   : > { %v2687_v17 = vpop.f32.mrb[4].mxu1 }
 0x51e   : > { %v1626_v18 = vmul.f32 0.35355338, %v2687_v17  ;;  %v1616_v20 = vpop.f32.mrb[5].mxu1  ;;  %v2807_v17 = vpack.c.bf16 %v1890_v11, %v1889_v16 }
 0x51f   : > { %v1625_v21 = vmul.f32 0.35355338, %v1616_v20 }
 0x520   : > { %v1628_v22 = vadd.f32 %v1626_v18, %v3521_v34 }
 0x521   : > { %v1627_v23 = vadd.f32 %v1625_v21, %v3523_v35 }
 0x522   : > { %v1632_v24 = vsel %vm999_vm12, %v1628_v22, -inf }
 0x523   : > { %1633 = vmax.xlane.f32.xlu0 %v1632_v24  ;;  %v1629_v25 = vsel %vm999_vm12, %v1627_v23, -inf }
 0x524   : > { %1630 = vmax.xlane.f32.xlu1 %v1629_v25 }
 0x539   : > { %1652 = vrot.lane.b32.xlu0 %v3469_v12, %s3150_s21 }
 0x5b0   : > { %v1634_v26 = vpop.xlane.xlu0 %1633 }
 0x5b1   : > { %v1636_v27 = vsub.f32 %v1628_v22, %v1634_v26  ;;  %v1631_v28 = vpop.xlane.xlu1 %1630  ;;  %v2537_v26 = vld [vmem:[%s769_s14] ss:$0 sm:$0xff]  ;;  %s788_s14 = scalar_lea.vmem %s3726_s11, %s3450_s30 }
 0x5b2   : > { %v1635_v29 = vsub.f32 %v1627_v23, %v1631_v28  ;;  %v2538_v28 = vld [vmem:[%s772_s24] ss:$0 sm:$0xff]  ;;  %s3782_s24 = sld [smem:[#allocation24_spill]] }
 0x5b3   : > { %v1639_v30 = vmul.f32 1.442695, %v1636_v27 }
 0x5b4   : > { %v1637_v31 = vmul.f32 1.442695, %v1635_v29  ;;  %v1653_v36 = vpop.permute.xlu0 %1652 }
 0x5b5   : > { %2959 = vpow2.f32 %v1639_v30  ;;  %v1655_v12 = vmul.f32 %v1653_v36, %v3477_v19  ;;  %v1656_v37 = vmul.f32 %v1653_v36, %v3475_v15  ;;  %v1998_v36 = vld [vmem:[%s785_s20 + $0x8] sm:$0xff] }
 0x5b6   : > { %2961 = vpow2.f32 %v1637_v31 }
 0x5b7   : > { %v2930_v38 = vpack.i.bf16 %v1656_v37, %v1655_v12  ;;  %v1999_v37 = vld [vmem:[%s785_s20 + $0x10] sm:$0xff] }
 0x5b8   : > { %s3783_s27 = smov %s3782_s24 }
 0x5bf   : > { %v2960_v34 = vpop.eup %2959 }
 0x5c0   : > { %v1644_v35 = vsel %vm999_vm12, %v2960_v34, 0.0  ;;  %v2962_v32 = vpop.eup %2961 }
 0x5c1   : > { %1645 = vadd.xlane.f32.xlu1 %v1644_v35  ;;  %v1641_v33 = vsel %vm999_vm12, %v2962_v32, 0.0 }
 0x5c5   : > { %1642 = vadd.xlane.f32.xlu1 %v1641_v33  ;;  %v1997_v33 = vld [vmem:[%s785_s20] sm:$0xff] }
 0x5c6   : > { %v2811_v12 = vpack.c.bf16 %v1998_v36, %v1997_v33 }
 0x5d6   : > { %2931 = vrot.lane.b32.xlu1 %v2930_v38, %s3150_s21  ;;  %v2000_v38 = vld [vmem:[%s785_s20 + $0x18] sm:$0xff]  ;;  %s2561_s21 = sshll.u32 %s3324_s19, 8  ;;  %s3151_s19 = smov [#allocation8]  }
 0x5d7   : > { %v2815_v39 = vpack.c.bf16 %v2000_v38, %v1999_v37  ;;  %s3671_s17 = scalar_lea.hbm %s3782_s24, %s2561_s21  ;;  %s3071_s23 = sshll.u32 %s3151_s19, 4  ;;  %s3072_s23 = int_to_ptr.vmem [resolvable:$false] %s3071_s23 }
 0x5d8   : > { %s3073_s20 = scalar_lea.vmem %s3072_s23, 512 }
 0x64e   : > { %v1646_v19 = vpop.xlane.xlu1 %1645 }
 0x64f   : > { %2963 = vrcp.f32 %v1646_v19  ;;  %v2823_v19 = vpack.c.bf16 %v2004_v44, %v2003_v43 }
 0x652   : > { %v1643_v15 = vpop.xlane.xlu1 %1642 }
 0x653   : > { %2965 = vrcp.f32 %v1643_v15 }
 0x656   : > { %v2932_v45 = vpop.permute.xlu1 %2931 }
 0x657   : > { %v2934_v46 = vunpack.i.h.bf16 %v2932_v45  ;;  %v2933_v47 = vunpack.i.l.bf16 %v2932_v45 }
 0x659   : > { %v2791_v48 = vpack.c.bf16 %v2934_v46, %v2933_v47  ;;  %v2964_v49 = vpop.eup %2963 }
 0x65a   : > { %v1650_v52 = vmul.f32 %v2964_v49, %v2960_v34 }
 0x65b   : > { %2792 = vmatprep.subr.bf16.mxu1 %v2791_v48 }
 0x65c   : > { %2794 = vmatpush3.bf16.msra.mxu1 %v2791_v48 }
 0x65d   : > { %v2966_v50 = vpop.eup %2965  ;;  %2812 = vmatprep.subr.bf16.mxu1 %v2811_v12 }
 0x65e   : > { %v1649_v51 = vmul.f32 %v2966_v50, %v2962_v32 }
 0x660   : > { %2692 = vmatprep.mubr.msk.f32.mxu1 %vm999_vm12, %v1649_v51 }
 0x661   : > { %2693 = vmatmul.mubr.msk.f32.vlgmr.msra.gmra.mrb[2].mxu1 %vm999_vm12, %v1650_v52 }
 0x662   : > { %2814 = vmatpush3.bf16.msra.mxu1 %v2811_v12 }
 0x663   : > { %2816 = vmatprep.subr.bf16.mxu1 %v2815_v39 }
 0x666   : > { %2818 = vmatpush3.bf16.msra.mxu1 %v2815_v39 }
 0x667   : > { %2820 = vmatprep.subr.bf16.mxu1 %v2819_v42 }
 0x66a   : > { %2822 = vmatpush3.bf16.msra.mxu1 %v2819_v42 }
 0x66b   : > { %2824 = vmatprep.subr.bf16.mxu1 %v2823_v19 }
 0x66e   : > { %2826 = vmatpush3.bf16.msra.mxu1 %v2823_v19 }
 0x734   : > { %v2694_v53 = vpop.f32.mrb[2].mxu1 }
 0x735   : > { %v1737_v54 = vpop.f32.mrb[3].mxu1 }
 0x736   : > { %2703 = vmatprep.mubr.msk.f32.mxu0 %vm813_vm0, %v1737_v54 }
 0x737   : > { %2704 = vmatmul.mubr.msk.f32.vlgmr.msra.gmra.mrb[6].mxu0 %vm813_vm0, %v2694_v53 }
 0x80a   : > { %v2705_v56 = vpop.f32.mrb[6].mxu0 }
 0x80b   : > { %v1837_v57 = vadd.f32 %v2705_v56, %v2534_v55  ;;  %v1831_v58 = vpop.f32.mrb[7].mxu0 }
 0x80c   : > { %v1832_v59 = vadd.f32 %v2534_v55, %v1831_v58 }
 0x80d   : > { %v1841_v60 = vadd.f32 %v1837_v57, %v3463_v7  ;;  %v1887_v7 = vld [vmem:[%s777_s26] sm:$0xff]  ;;  %s780_s26 = scalar_lea.vmem %s3724_s9, %s3450_s30 }
 0x80e   : > { %v1840_v61 = vadd.f32 %v1832_v59, %v3459_v5  ;;  %v2803_v14 = vpack.c.bf16 %v1888_v13, %v1887_v7  ;;  %v2539_v15 = vld [vmem:[%s780_s26] ss:$0 sm:$0xff]  ;;  %s797_s26 = scalar_lea.vmem %s3780_s29, %s3450_s30 }
 0x80f   : > { %v1847_v62 = vsel %vm813_vm0, %v1841_v60, 0.0 }
 0x810   : > { %1848 = vadd.xlane.f32.xlu1 %v1847_v62  ;;  %v1844_v63 = vsel %vm813_vm0, %v1840_v61, 0.0  ;;  %2804 = vmatprep.subr.bf16.mxu0 %v2803_v14 }
 0x811   : > { %1845 = vadd.xlane.f32.xlu0 %v1844_v63  ;;  %2806 = vmatpush3.bf16.msra.mxu0 %v2803_v14 }
 0x812   : > { %2808 = vmatprep.subr.bf16.mxu0 %v2807_v17 }
 0x815   : > { %2810 = vmatpush3.bf16.msra.mxu0 %v2807_v17 }
 0x89d   : > { %v1849_v0 = vpop.xlane.xlu1 %1848 }
 0x89e   : > { %v1852_v1 = vmul.f32 0.03125, %v1849_v0  ;;  %v1846_v3 = vpop.xlane.xlu0 %1845 }
 0x89f   : > { %v1851_v2 = vmul.f32 0.03125, %v1846_v3 }
 0x8a0   : > { %v1854_v4 = vsub.f32 %v1841_v60, %v1852_v1 }
 0x8a1   : > { %v1853_v6 = vsub.f32 %v1840_v61, %v1851_v2  ;;  %v2542_v2 = vld [vmem:[%s788_s14] ss:$0 sm:$0xff]  ;;  %s2248_s14 = sshll.u32 %s750_s15, 4  ;;  %s3666_s14 = int_to_ptr.vmem [resolvable:$true] %s2248_s14 }
 0x8a2   : > { %v1856_v10 = vmul.f32 %v1854_v4, %v1854_v4  ;;  %p3074_p4 = scmp.lt.s32.totalorder %s3666_s14, %s3072_s23 }
 0x8a3   : > { %v1855_v8 = vmul.f32 %v1853_v6, %v1853_v6 }
 0x8a4   : > { %v1860_v5 = vsel %vm813_vm0, %v1856_v10, 0.0 }
 0x8a5   : > { %v1857_v9 = vsel %vm813_vm0, %v1855_v8, 0.0 }
 0x8a6   : > { %1858 = vadd.xlane.f32.xlu0 %v1857_v9 }
 0x8aa   : > { %1861 = vadd.xlane.f32.xlu0 %v1860_v5 }
 0x933   : > { %v1859_v18 = vpop.xlane.xlu0 %1858 }
 0x934   : > { %v1863_v20 = vmul.f32 0.03125, %v1859_v18 }
 0x936   : > { %v1865_v21 = vadd.f32 1e-12, %v1863_v20 }
 0x937   : > { %v1862_v22 = vpop.xlane.xlu0 %1861 }
 0x938   : > { %2967 = vrsqrt.f32 %v1865_v21  ;;  %v1864_v23 = vmul.f32 0.03125, %v1862_v22 }
 0x93a   : > { %v1866_v24 = vadd.f32 1e-12, %v1864_v23 }
 0x93c   : > { %2969 = vrsqrt.f32 %v1866_v24 }
 0x942   : > { %v2968_v25 = vpop.eup %2967 }
 0x943   : > { %v1869_v27 = vmul.f32 %v2968_v25, %v1853_v6  ;;  %v2140_v25 = vld [vmem:[%s3442_s13] sm:$0xff] }
 0x945   : > { %v1877_v29 = vmul.f32 %v2537_v26, %v1869_v27 }
 0x946   : > { %v2970_v30 = vpop.eup %2969 }
 0x947   : > { %v1870_v31 = vmul.f32 %v2970_v30, %v1854_v4  ;;  %v3623_v34 = vadd.f32 %v2538_v28, %v1877_v29  ;;  %v2143_v29 = vld [vmem:[%s3442_s13 + $0x18] sm:$0xff] }
 0x949   : > { %v1878_v35 = vmul.f32 %v2537_v26, %v1870_v31  ;;  %2714 = vmatprep.mubr.msk.f32.mxu0 %vm813_vm0, %v3623_v34  ;;  %v2141_v26 = vld [vmem:[%s3442_s13 + $0x8] sm:$0xff] }
 0x94a   : > { %v2827_v27 = vpack.c.bf16 %v2141_v26, %v2140_v25 }
 0x94b   : > { %v1886_v32 = vadd.f32 %v2538_v28, %v1878_v35  ;;  %v2142_v28 = vld [vmem:[%s3442_s13 + $0x10] sm:$0xff]  ;;  %s791_s13 = scalar_lea.vmem %s3727_s12, %s3450_s30  ;;  %s3067_s30 = scalar_lea.vmem %s3666_s14, 256 }
 0x94c   : > { %2828 = vmatprep.subr.bf16.mxu0 %v2827_v27  ;;  %v2831_v30 = vpack.c.bf16 %v2143_v29, %v2142_v28  ;;  %v2545_v37 = vld [vmem:[%s791_s13] ss:$0 sm:$0xff]  ;;  %p3068_p12 = scmp.ne.s32.totalorder %s3666_s14, %s3067_s30  ;;  %p3075_p1 = scmp.lt.s32.totalorder %s3073_s20, %s3067_s30 }
 0x94d   : > { %2715 = vmatmul.mubr.msk.f32.vlgmr.msra.gmra.mrb[8].mxu0 %vm813_vm0, %v1886_v32 }
 0x94e   : > { %2830 = vmatpush3.bf16.msra.mxu0 %v2827_v27  ;;  %p3069_p6 = pnand %p3068_p12, %p3784_p2  ;;  %p3076_p3 = por %p3075_p1, %p3074_p4 }
 0x94f   : > { %2832 = vmatprep.subr.bf16.mxu0 %v2831_v30 }
 0x950   : > { %p3070_p0 = pneg %p3069_p6 }
 0x952   : > { %2834 = vmatpush3.bf16.msra.mxu0 %v2831_v30  ;;  %p3077_p11 = pnand %p3076_p3, %p3070_p0 }
 0xa20   : > { %v2716_v45 = vpop.f32.mrb[8].mxu0 }
 0xa21   : > { %v1976_v46 = vadd.f32 %v2716_v45, %v2539_v15  ;;  %v1970_v47 = vpop.f32.mrb[9].mxu0 }
 0xa22   : > { %v1971_v48 = vadd.f32 %v2539_v15, %v1970_v47  ;;  %v2547_v15 = vld [vmem:[%s797_s26] ss:$0 sm:$0xff] }
 0xa23   : > { %v1980_v49 = vmul.f32 %v1976_v46, %v1976_v46 }
 0xa24   : > { %v1979_v50 = vmul.f32 %v1971_v48, %v1971_v48 }
 0xa25   : > { %v1982_v51 = vmul.f32 %v1980_v49, %v1976_v46 }
 0xa26   : > { %v1981_v52 = vmul.f32 %v1979_v50, %v1971_v48 }
 0xa27   : > { %v1984_v53 = vmul.f32 0.044715, %v1982_v51 }
 0xa28   : > { %v1983_v54 = vmul.f32 0.044715, %v1981_v52 }
 0xa29   : > { %v1986_v55 = vadd.f32 %v1984_v53, %v1976_v46 }
 0xa2a   : > { %v1985_v56 = vadd.f32 %v1983_v54, %v1971_v48 }
 0xa2b   : > { %v1988_v57 = vmul.f32 0.7978846, %v1986_v55 }
 0xa2c   : > { %v1987_v58 = vmul.f32 0.7978846, %v1985_v56 }
 0xa2d   : > { %2971 = vtanh.f32 %v1988_v57 }
 0xa2e   : > { %2973 = vtanh.f32 %v1987_v58 }
 0xa37   : > { %v2972_v59 = vpop.eup %2971 }
 0xa38   : > { %v2974_v60 = vpop.eup %2973  ;;  %v1992_v61 = vadd.f32 1.0, %v2972_v59 }
 0xa39   : > { %v1991_v62 = vadd.f32 1.0, %v2974_v60 }
 0xa3a   : > { %v1994_v63 = vmul.f32 0.5, %v1992_v61 }
 0xa3b   : > { %v1993_v0 = vmul.f32 0.5, %v1991_v62 }
 0xa3c   : > { %v1996_v3 = vmul.f32 %v1994_v63, %v1976_v46 }
 0xa3d   : > { %v1995_v1 = vmul.f32 %v1993_v0, %v1971_v48 }
 0xa3f   : > { %2733 = vmatprep.mubr.msk.f32.mxu1 %vm2012_vm13, %v1995_v1 }
 0xa40   : > { %2734 = vmatmul.mubr.msk.f32.vlgmr.msra.gmra.mrb[6].mxu1 %vm2012_vm13, %v1996_v3 }
 0xb13   : > { %v2735_v4 = vpop.f32.mrb[6].mxu1 }
 0xb14   : > { %v2091_v6 = vadd.f32 %v2735_v4, %v2542_v2  ;;  %v2085_v8 = vpop.f32.mrb[7].mxu1 }
 0xb15   : > { %v2086_v9 = vadd.f32 %v2542_v2, %v2085_v8 }
 0xb16   : > { %v2095_v10 = vadd.f32 %v2091_v6, %v1886_v32 }
 0xb17   : > { %v2094_v5 = vadd.f32 %v2086_v9, %v3623_v34 }
 0xb18   : > { %v2101_v7 = vsel %vm813_vm0, %v2095_v10, 0.0 }
 0xb19   : > { %2102 = vadd.xlane.f32.xlu1 %v2101_v7  ;;  %v2098_v13 = vsel %vm813_vm0, %v2094_v5, 0.0 }
 0xb1a   : > { %2099 = vadd.xlane.f32.xlu0 %v2098_v13 }
 0xba6   : > { %v2103_v14 = vpop.xlane.xlu1 %2102 }
 0xba7   : > { %v2105_v16 = vmul.f32 0.03125, %v2103_v14  ;;  %v2100_v11 = vpop.xlane.xlu0 %2099 }
 0xba8   : > { %v2104_v17 = vmul.f32 0.03125, %v2100_v11 }
 0xba9   : > { %v2107_v18 = vsub.f32 %v2095_v10, %v2105_v16 }
 0xbaa   : > { %v2106_v20 = vsub.f32 %v2094_v5, %v2104_v17 }
 0xbab   : > { %v2109_v21 = vmul.f32 %v2107_v18, %v2107_v18 }
 0xbac   : > { %v2108_v22 = vmul.f32 %v2106_v20, %v2106_v20 }
 0xbad   : > { %v2113_v23 = vsel %vm813_vm0, %v2109_v21, 0.0 }
 0xbae   : > { %2114 = vadd.xlane.f32.xlu1 %v2113_v23  ;;  %v2110_v24 = vsel %vm813_vm0, %v2108_v22, 0.0 }
 0xbaf   : > { %2111 = vadd.xlane.f32.xlu0 %v2110_v24 }
 0xc3b   : > { %v2115_v31 = vpop.xlane.xlu1 %2114 }
 0xc3c   : > { %v2117_v34 = vmul.f32 0.03125, %v2115_v31  ;;  %v2112_v35 = vpop.xlane.xlu0 %2111 }
 0xc3d   : > { %v2116_v32 = vmul.f32 0.03125, %v2112_v35 }
 0xc3e   : > { %v2119_v33 = vadd.f32 1e-12, %v2117_v34 }
 0xc3f   : > { %v2118_v36 = vadd.f32 1e-12, %v2116_v32 }
 0xc40   : > { %2975 = vrsqrt.f32 %v2119_v33 }
 0xc41   : > { %2977 = vrsqrt.f32 %v2118_v36 }
 0xc4a   : > { %v2976_v12 = vpop.eup %2975 }
 0xc4b   : > { %v2978_v38 = vpop.eup %2977  ;;  %v2123_v39 = vmul.f32 %v2976_v12, %v2107_v18 }
 0xc4c   : > { %v2122_v40 = vmul.f32 %v2978_v38, %v2106_v20 }
 0xc4d   : > { %v2131_v42 = vmul.f32 %v2545_v37, %v2123_v39 }
 0xc4e   : > { %v2130_v43 = vmul.f32 %v2545_v37, %v2122_v40 }
 0xc4f   : > { %v2139_v19 = vadd.f32 %v2546_v41, %v2131_v42 }
 0xc50   : > { %v2138_v44 = vadd.f32 %v2546_v41, %v2130_v43 }
 0xc52   : > { %2744 = vmatprep.mubr.msk.f32.mxu0 %vm813_vm0, %v2138_v44 }
 0xc53   : > { %2745 = vmatmul.mubr.msk.f32.vlgmr.msra.gmra.mrb[10].mxu0 %vm813_vm0, %v2139_v19 }
 0xd26   : > { %v2746_v45 = vpop.f32.mrb[10].mxu0 }
 0xd27   : > { %v2229_v46 = vadd.f32 %v2746_v45, %v2547_v15  ;;  %v2223_v47 = vpop.f32.mrb[11].mxu0 }
 0xd28   : > { %v2224_v48 = vadd.f32 %v2547_v15, %v2223_v47 }
 0xd29   : > { %2233 = vst [vmem:[%s750_s15 + $0x8] sm:$0xff] %v2229_v46 }
 0xd2a   : > { %2232 = vst [vmem:[%s750_s15] sm:$0xff] %v2224_v48 }
 0xd2b   : > { %3080 = shalt.err (!%p3077_p11)
}
 0xd2c   : > { %s3081_s28 = scalar_lea.hbm %s3671_s17, 256  ;;  %s3085_s15 = scalar_lea.hbm %s3783_s27, 512 }
 0xd2d   : > { %p3082_p9 = scmp.ne.s32.totalorder %s3671_s17, %s3081_s28  ;;  %p3086_p13 = scmp.lt.u32.totalorder %s3671_s17, %s3783_s27 }
 0xd2e   : > { %p3087_p5 = scmp.lt.u32.totalorder %s3085_s15, %s3081_s28  ;;  %p3089_p12 = scmp.lt.u32.totalorder %s3081_s28, %s3671_s17 }
 0xd2f   : > { %p3083_p8 = pnand %p3082_p9, %p3784_p2 }
 0xd30   : > { %p3088_p7 = por %p3087_p5, %p3086_p13 }
 0xd31   : > { %p3084_p10 = pneg %p3083_p8 }
 0xd32   : > { %p3090_p6 = por %p3089_p12, %p3088_p7 }
 0xd34   : > { %p3091_p0 = pnand %p3090_p6, %p3084_p10 }
 0xd36   : > { %3094 = shalt.err (!%p3091_p0)
}
 0xd37   : > { %s3152_s13 = smov 128   ;;  %s3153_s24 = smov 8  }
 0xd38   : > { %2849 = dma.vmem_to_hbm [thread:$0]  (%p3784_p2), %s3666_s14, 256, %s3671_s17, %s2235_s25, %s3152_s13, %s3152_s13, %s3153_s24  }
 0xd39 PF: > { %s3785_s30 = sld [smem:[#allocation13_spill]]  ;;  %s3786_s19 = sld [smem:[#allocation19_spill]] }
 0xd3a   : > { %s3787_s23 = sld [smem:[#allocation15_spill]] }
 0xd3f   : > { %s2263_s20 = sand.u32 1, %s3785_s30   ;;  %p3788_p4 = scmp.ne.s32.totalorder %s3786_s19, 0 }
 0xd40   : > { %p3789_p1 = scmp.ge.s32.totalorder %s3787_s23, 2  ;;  %s2264_s28 = scalar_lea.sflag [#allocation4], %s2263_s20 }
 0xd42   : > { %p2863_p3 = pnand %p3789_p1, %p3788_p4 }
 0xd44   : > { %3124 = dma.done.wait (!%p2863_p3), %s2264_s28, 256  }
 0xd45   : > { %3126 = vsyncadd (!%p2863_p3), %s2264_s28, 4294967040  ;;  %s3790_s24 = sld [smem:[#allocation16_spill]]  ;;  %s3791_s29 = sld [smem:[#allocation14_spill]] }
 0xd46   : > { %s3792_s23 = sld [smem:[#allocation17_spill]]  ;;  %s3793_s21 = smov %s3133_s22 }
 0xd4b   : > { %p30_p11 = scmp.ge.s32.totalorder %s3790_s24, 4   ;;  %s3794_s22 = smov %s3791_s29 }
 0xd4d   :  { %32 = sbr.rel (!%p30_p11) target bundleno = 12 (0xc), region = 183 }
 0xd54   :  { %2269 = vsyncpa [#allocation3], 1 }
 0xd55   :  { %2271 = vsyncpa [#allocation3 + $0x1], 1 }
 0xd56   :  { %2272 = vsyncpa [#allocation6], 1 }
 0xd57   :  { %2273 = vsyncpa [#allocation4], 1 }
 0xd58   :  { %2275 = vsyncpa [#allocation4 + $0x1], 1 }

</bundles_post_ra>
